<compile_context>
chip_gen: v5e
topology: v5e:2x2
jax: 0.10.0
libtpu: 0.0.40
codegen_flags: <defaults>
</compile_context>

<pallas_src>
import functools
import math

import jax
import jax.numpy as jnp
from jax import lax
from jax.experimental import pallas as pl
from jax.experimental.pallas import tpu as pltpu


# ----------------------------- in-kernel helpers -----------------------------

def _layernorm(x, w, b, eps=1e-5):
    # f32 LayerNorm over the last axis (matches nn.LayerNorm(dim) defaults).
    mu = jnp.mean(x, axis=-1, keepdims=True)
    xc = x - mu
    var = jnp.mean(xc * xc, axis=-1, keepdims=True)
    return xc * lax.rsqrt(var + eps) * w + b


def _gelu_tanh(x):
    # tanh-approx GELU (tanh goes to the EUP slot); ~1e-3 rel. difference vs the
    # erf form used by torch.nn.GELU() — fine for inference, not bit-matching.
    c = 0.7978845608028654  # sqrt(2/pi)
    return 0.5 * x * (1.0 + jnp.tanh(c * (x + 0.044715 * x * x * x)))


# --------------------------------- kernel ------------------------------------

def transformer_kernel(x_ref,
                       ln1_w_ref, ln1_b_ref,
                       wqkv_ref, wo_ref, bo_ref,
                       ln2_w_ref, ln2_b_ref,
                       w1_ref, b1_ref, w2_ref, b2_ref,
                       out_ref,
                       x_scr, ctx_scr,
                       *, heads, dim_head, kv_chunk):
    f32 = jnp.float32
    bf16 = jnp.bfloat16
    inner = heads * dim_head

    d = pl.program_id(1)                       # depth (layer) index
    last = pl.num_programs(1) - 1

    # Load the residual stream into VMEM scratch at the first layer of each batch.
    @pl.when(d == 0)
    def _():
        x_scr[...] = x_ref[0]

    x = x_scr[...]                             # (n, dim) f32, pre-norm residual
    n = x.shape[0]

    # ---------------- PreNorm #1 + Attention ----------------
    y = _layernorm(x, ln1_w_ref[0], ln1_b_ref[0])
    yb = y.astype(bf16)

    # Single lane-dense QKV projection: (n, dim) x (dim, 3*inner).
    # Column order is [q | k | v], head-major within each; softmax scale is
    # already folded into the q columns host-side.
    qkv = jnp.dot(yb, wqkv_ref[0], preferred_element_type=f32).astype(bf16)

    # contract last dim of lhs with last dim of rhs (q @ k^T), no batch dims
    dn_qk = (((1,), (1,)), ((), ()))

    for hd in range(heads):
        lo = hd * dim_head
        hi = lo + dim_head
        q_h = qkv[:, lo:hi]                                     # (n, dh) bf16

        # Flash-style online softmax over KV chunks — (n, n) never materializes
        # for more than one chunk, and normalization is deferred to the end.
        m_i = jnp.full((n, 1), -jnp.inf, f32)
        l_i = jnp.zeros((n, 1), f32)
        acc = jnp.zeros((n, dim_head), f32)
        for c0 in range(0, n, kv_chunk):
            c1 = min(n, c0 + kv_chunk)
            k_c = qkv[c0:c1, inner + lo: inner + hi]            # (c, dh) bf16
            v_c = qkv[c0:c1, 2 * inner + lo: 2 * inner + hi]    # (c, dh) bf16
            s = lax.dot_general(q_h, k_c, dn_qk,
                                preferred_element_type=f32)     # (n, c) f32
            m_new = jnp.maximum(m_i, jnp.max(s, axis=-1, keepdims=True))
            alpha = jnp.exp(m_i - m_new)
            p = jnp.exp(s - m_new)
            l_i = alpha * l_i + jnp.sum(p, axis=-1, keepdims=True)
            acc = alpha * acc + jnp.dot(p.astype(bf16), v_c,
                                        preferred_element_type=f32)
            m_i = m_new

        # Deferred normalization on the (n, dh) accumulator (EUP reciprocal),
        # merged head-major into the (n, inner) context scratch.
        ctx_scr[:, lo:hi] = acc * pl.reciprocal(l_i, approx=True)

    # Single output projection with K = inner (no per-head (h,n,dim) intermediate).
    attn_out = jnp.dot(ctx_scr[...].astype(bf16), wo_ref[0],
                       preferred_element_type=f32) + bo_ref[0]
    x1 = x + attn_out                          # residual adds the PRE-norm input

    # ---------------- PreNorm #2 + FeedForward ----------------
    y2 = _layernorm(x1, ln2_w_ref[0], ln2_b_ref[0])
    h1 = jnp.dot(y2.astype(bf16), w1_ref[0], preferred_element_type=f32) + b1_ref[0]
    h1 = _gelu_tanh(h1)
    ff = jnp.dot(h1.astype(bf16), w2_ref[0], preferred_element_type=f32) + b2_ref[0]
    x2 = x1 + ff

    # Carry the residual stream to the next layer; emit only after the last layer.
    x_scr[...] = x2

    @pl.when(d == last)
    def _():
        out_ref[0] = x2.astype(out_ref.dtype)


# ------------------------------ wrapper / glue --------------------------------

def _vmem_limit_bytes(n, dim, heads, dim_head, mlp_dim):
    """Rough per-kernel VMEM footprint (weights double-buffered over depth)."""
    inner = heads * dim_head
    wb = 2 * (dim * 3 * inner + inner * dim + dim * mlp_dim + mlp_dim * dim)   # bf16
    wb += 4 * (6 * dim + mlp_dim)                                              # f32 LN/bias
    io = 4 * n * dim
    scr = 4 * (n * dim + n * inner)
    interm = 6 * n * (3 * inner) + 4 * n * mlp_dim + 24 * n * dim
    est = 2 * wb + 4 * io + scr + 2 * interm
    return int(min(64 << 20, max(8 << 20, 2 * est)))       # clamp to v7x physical


def make_transformer_call(batch, n, dim, depth, heads, dim_head, mlp_dim,
                          kv_chunk=None):
    inner = heads * dim_head
    if kv_chunk is None:
        # Keep the KV tile >= 256 on v6e/v7x for MXU column fill once n is large.
        kv_chunk = min(n, 512)

    def wspec(*shape):
        nd = len(shape)
        return pl.BlockSpec((1,) + shape, lambda b, d: (d,) + (0,) * nd)

    kernel = functools.partial(transformer_kernel, heads=heads,
                               dim_head=dim_head, kv_chunk=kv_chunk)

    grid_spec = pltpu.PrefetchScalarGridSpec(
        num_scalar_prefetch=0,
        grid=(batch, depth),                                   # depth innermost
        in_specs=[
            pl.BlockSpec((1, n, dim), lambda b, d: (b, 0, 0)),  # x (read at d==0)
            wspec(1, dim), wspec(1, dim),                       # ln1 gamma, beta (f32)
            wspec(dim, 3 * inner),                              # Wqkv flat, bf16
            wspec(inner, dim), wspec(1, dim),                   # Wo bf16, bias f32
            wspec(1, dim), wspec(1, dim),                       # ln2 gamma, beta (f32)
            wspec(dim, mlp_dim), wspec(1, mlp_dim),             # FFN W1 bf16, b1 f32
            wspec(mlp_dim, dim), wspec(1, dim),                 # FFN W2 bf16, b2 f32
        ],
        out_specs=pl.BlockSpec((1, n, dim), lambda b, d: (b, 0, 0)),
        scratch_shapes=[
            pltpu.VMEM((n, dim), jnp.float32),                  # residual stream
            pltpu.VMEM((n, inner), jnp.float32),                # merged head context
        ],
    )

    return pl.pallas_call(
        kernel,
        out_shape=jax.ShapeDtypeStruct((batch, n, dim), jnp.float32),
        grid_spec=grid_spec,
        compiler_params=pltpu.CompilerParams(
            dimension_semantics=("parallel", "arbitrary"),
            vmem_limit_bytes=_vmem_limit_bytes(n, dim, heads, dim_head, mlp_dim)),
    )


def init_params(key, depth, dim, heads, dim_head, mlp_dim):
    """Deterministic synthetic params, pre-arranged for the kernel:
       - Wqkv flat (depth, dim, 3*inner), columns [q|k|v] head-major, q pre-scaled.
       - Wo flat (depth, inner, dim) (== to_out weight.T).
       - Matmul weights bf16; LayerNorm params and biases f32."""
    inner = heads * dim_head
    scale = dim_head ** (-0.5)

    def unif(k, shape, fan_in):
        bound = 1.0 / math.sqrt(fan_in)
        return jax.random.uniform(k, shape, jnp.float32, -bound, bound)

    wqkv_l, wo_l, bo_l, w1_l, b1_l, w2_l, b2_l = [], [], [], [], [], [], []
    for _ in range(depth):
        key, k0, k1, k2, k3, k4, k5, k6 = jax.random.split(key, 8)
        wqkv = unif(k0, (dim, 3 * inner), dim)
        wqkv = wqkv.at[:, :inner].multiply(scale)      # fold softmax scale into Wq
        wqkv_l.append(wqkv.astype(jnp.bfloat16))
        wo_l.append(unif(k1, (inner, dim), inner).astype(jnp.bfloat16))
        bo_l.append(unif(k2, (1, dim), inner))
        w1_l.append(unif(k3, (dim, mlp_dim), dim).astype(jnp.bfloat16))
        b1_l.append(unif(k4, (1, mlp_dim), dim))
        w2_l.append(unif(k5, (mlp_dim, dim), mlp_dim).astype(jnp.bfloat16))
        b2_l.append(unif(k6, (1, dim), mlp_dim))

    return dict(
        ln1_w=jnp.ones((depth, 1, dim), jnp.float32),
        ln1_b=jnp.zeros((depth, 1, dim), jnp.float32),
        wqkv=jnp.stack(wqkv_l), wo=jnp.stack(wo_l), bo=jnp.stack(bo_l),
        ln2_w=jnp.ones((depth, 1, dim), jnp.float32),
        ln2_b=jnp.zeros((depth, 1, dim), jnp.float32),
        w1=jnp.stack(w1_l), b1=jnp.stack(b1_l),
        w2=jnp.stack(w2_l), b2=jnp.stack(b2_l),
    )


def transformer_forward(x, p, transformer_fn):
    return transformer_fn(x,
                          p['ln1_w'], p['ln1_b'],
                          p['wqkv'], p['wo'], p['bo'],
                          p['ln2_w'], p['ln2_b'],
                          p['w1'], p['b1'], p['w2'], p['b2'])


if __name__ == "__main__":
    # Small, lane-dense demo shapes (dim, inner, mlp_dim multiples of 128; n mult. of 8).
    B, N, DIM = 2, 16, 128
    HEADS, DIM_HEAD, MLP_DIM, DEPTH = 4, 32, 256, 2

    key = jax.random.PRNGKey(0)
    kx, kp = jax.random.split(key, 2)

    x = jax.random.normal(kx, (B, N, DIM), jnp.float32)
    params = init_params(kp, DEPTH, DIM, HEADS, DIM_HEAD, MLP_DIM)

    transformer_fn = make_transformer_call(B, N, DIM, DEPTH, HEADS, DIM_HEAD, MLP_DIM)

    out = transformer_forward(x, params, transformer_fn)
    jax.block_until_ready(out)

    assert out.shape == (B, N, DIM)
    assert bool(jnp.isfinite(out).all())
    print("KERNEL_OK")
</pallas_src>

<mosaic_0001>
module attributes {stable_mosaic.version = 11 : i64} {
  func.func @transformer_kernel(%arg0: i32, %arg1: i32, %arg2: memref<1x16x128xf32, #tpu.memory_space<vmem>>, %arg3: memref<1x1x128xf32, #tpu.memory_space<vmem>>, %arg4: memref<1x1x128xf32, #tpu.memory_space<vmem>>, %arg5: memref<1x128x384xbf16, #tpu.memory_space<vmem>>, %arg6: memref<1x128x128xbf16, #tpu.memory_space<vmem>>, %arg7: memref<1x1x128xf32, #tpu.memory_space<vmem>>, %arg8: memref<1x1x128xf32, #tpu.memory_space<vmem>>, %arg9: memref<1x1x128xf32, #tpu.memory_space<vmem>>, %arg10: memref<1x128x256xbf16, #tpu.memory_space<vmem>>, %arg11: memref<1x1x256xf32, #tpu.memory_space<vmem>>, %arg12: memref<1x256x128xbf16, #tpu.memory_space<vmem>>, %arg13: memref<1x1x128xf32, #tpu.memory_space<vmem>>, %arg14: memref<1x16x128xf32, #tpu.memory_space<vmem>>, %arg15: memref<16x128xf32, #tpu.memory_space<vmem>>, %arg16: memref<16x128xf32, #tpu.memory_space<vmem>>) attributes {dimension_semantics = [#tpu.dimension_semantics<parallel>, #tpu.dimension_semantics<arbitrary>], iteration_bounds = array<i64: 2, 2>, scalar_prefetch = 0 : i64, scratch_operands = 2 : i64, tpu.core_type = #tpu.core_type<tc>, window_params = [{transform_indices = @transform_0, window_bounds = array<i64: 1, 16, 128>}, {transform_indices = @transform_1, window_bounds = array<i64: 1, 1, 128>}, {transform_indices = @transform_2, window_bounds = array<i64: 1, 1, 128>}, {transform_indices = @transform_3, window_bounds = array<i64: 1, 128, 384>}, {transform_indices = @transform_4, window_bounds = array<i64: 1, 128, 128>}, {transform_indices = @transform_5, window_bounds = array<i64: 1, 1, 128>}, {transform_indices = @transform_6, window_bounds = array<i64: 1, 1, 128>}, {transform_indices = @transform_7, window_bounds = array<i64: 1, 1, 128>}, {transform_indices = @transform_8, window_bounds = array<i64: 1, 128, 256>}, {transform_indices = @transform_9, window_bounds = array<i64: 1, 1, 256>}, {transform_indices = @transform_10, window_bounds = array<i64: 1, 256, 128>}, {transform_indices = @transform_11, window_bounds = array<i64: 1, 1, 128>}, {transform_indices = @transform_12, window_bounds = array<i64: 1, 16, 128>}]} {
    %c0_i32 = arith.constant 0 : i32
    %0 = arith.cmpi eq, %arg1, %c0_i32 : i32
    %1 = arith.extui %0 : i1 to i32
    %c0_i32_0 = arith.constant 0 : i32
    %2 = arith.cmpi ne, %1, %c0_i32_0 : i32
    scf.if %2 {
      %c0_90 = arith.constant 0 : index
      %c0_91 = arith.constant 0 : index
      %c0_92 = arith.constant 0 : index
      %213 = vector.load %arg2[%c0_90, %c0_91, %c0_92] : memref<1x16x128xf32, #tpu.memory_space<vmem>>, vector<1x16x128xf32>
      %214 = vector.shape_cast %213 : vector<1x16x128xf32> to vector<16x128xf32>
      %c0_93 = arith.constant 0 : index
      %c0_94 = arith.constant 0 : index
      %215 = vector.load %arg15[%c0_93, %c0_94] : memref<16x128xf32, #tpu.memory_space<vmem>>, vector<16x128xf32>
      tpu.vector_store %arg15[%c0_93, %c0_94], %214 {strides = array<i32>} : memref<16x128xf32, #tpu.memory_space<vmem>>, vector<16x128xf32>,
    } else {
    }
    %c0 = arith.constant 0 : index
    %c0_1 = arith.constant 0 : index
    %3 = vector.load %arg15[%c0, %c0_1] : memref<16x128xf32, #tpu.memory_space<vmem>>, vector<16x128xf32>
    %c0_2 = arith.constant 0 : index
    %c0_3 = arith.constant 0 : index
    %c0_4 = arith.constant 0 : index
    %4 = vector.load %arg3[%c0_2, %c0_3, %c0_4] : memref<1x1x128xf32, #tpu.memory_space<vmem>>, vector<1x1x128xf32>
    %5 = vector.shape_cast %4 : vector<1x1x128xf32> to vector<1x128xf32>
    %c0_5 = arith.constant 0 : index
    %c0_6 = arith.constant 0 : index
    %c0_7 = arith.constant 0 : index
    %6 = vector.load %arg4[%c0_5, %c0_6, %c0_7] : memref<1x1x128xf32, #tpu.memory_space<vmem>>, vector<1x1x128xf32>
    %7 = vector.shape_cast %6 : vector<1x1x128xf32> to vector<1x128xf32>
    %cst = arith.constant dense<0.000000e+00> : vector<16xf32>
    %8 = vector.multi_reduction <add>, %3, %cst [1] : vector<16x128xf32> to vector<16xf32>
    %9 = vector.shape_cast %8 : vector<16xf32> to vector<16x1xf32>
    %cst_8 = arith.constant 1.280000e+02 : f32
    %10 = vector.broadcast %cst_8 : f32 to vector<16x1xf32>
    %11 = arith.divf %9, %10 : vector<16x1xf32>
    %12 = vector.broadcast %11 : vector<16x1xf32> to vector<16x128xf32>
    %13 = arith.subf %3, %12 : vector<16x128xf32>
    %14 = arith.mulf %13, %13 : vector<16x128xf32>
    %cst_9 = arith.constant dense<0.000000e+00> : vector<16xf32>
    %15 = vector.multi_reduction <add>, %14, %cst_9 [1] : vector<16x128xf32> to vector<16xf32>
    %16 = vector.shape_cast %15 : vector<16xf32> to vector<16x1xf32>
    %cst_10 = arith.constant 1.280000e+02 : f32
    %17 = vector.broadcast %cst_10 : f32 to vector<16x1xf32>
    %18 = arith.divf %16, %17 : vector<16x1xf32>
    %cst_11 = arith.constant 9.99999974E-6 : f32
    %19 = vector.broadcast %cst_11 : f32 to vector<16x1xf32>
    %20 = arith.addf %18, %19 : vector<16x1xf32>
    %21 = math.rsqrt %20 : vector<16x1xf32>
    %22 = vector.broadcast %21 : vector<16x1xf32> to vector<16x128xf32>
    %23 = arith.mulf %13, %22 : vector<16x128xf32>
    %24 = vector.broadcast %5 : vector<1x128xf32> to vector<16x128xf32>
    %25 = arith.mulf %23, %24 : vector<16x128xf32>
    %26 = vector.broadcast %7 : vector<1x128xf32> to vector<16x128xf32>
    %27 = arith.addf %25, %26 : vector<16x128xf32>
    %28 = arith.truncf %27 : vector<16x128xf32> to vector<16x128xbf16>
    %c0_12 = arith.constant 0 : index
    %c0_13 = arith.constant 0 : index
    %c0_14 = arith.constant 0 : index
    %29 = vector.load %arg5[%c0_12, %c0_13, %c0_14] : memref<1x128x384xbf16, #tpu.memory_space<vmem>>, vector<1x128x384xbf16>
    %30 = vector.shape_cast %29 : vector<1x128x384xbf16> to vector<128x384xbf16>
    %cst_15 = arith.constant dense<0.000000e+00> : vector<16x384xf32>
    %31 = tpu.matmul %28, %30, %cst_15 {dimension_numbers = #tpu.dot_dimension_numbers<[1], [0], [0], [1], [0, 0, 1, 1], [], []>} : vector<16x128xbf16>, vector<128x384xbf16>, vector<16x384xf32> -> vector<16x384xf32>
    %32 = arith.truncf %31 : vector<16x384xf32> to vector<16x384xbf16>
    %33 = vector.extract_strided_slice %32 {offsets = [0, 0], sizes = [16, 32], strides = [1, 1]} : vector<16x384xbf16> to vector<16x32xbf16>
    %cst_16 = arith.constant 0xFF800000 : f32
    %34 = vector.broadcast %cst_16 : f32 to vector<16x1xf32>
    %cst_17 = arith.constant 0.000000e+00 : f32
    %35 = vector.broadcast %cst_17 : f32 to vector<16x1xf32>
    %cst_18 = arith.constant 0.000000e+00 : f32
    %36 = vector.broadcast %cst_18 : f32 to vector<16x32xf32>
    %37 = vector.extract_strided_slice %32 {offsets = [0, 128], sizes = [16, 32], strides = [1, 1]} : vector<16x384xbf16> to vector<16x32xbf16>
    %38 = vector.extract_strided_slice %32 {offsets = [0, 256], sizes = [16, 32], strides = [1, 1]} : vector<16x384xbf16> to vector<16x32xbf16>
    %cst_19 = arith.constant dense<0.000000e+00> : vector<16x16xf32>
    %39 = tpu.matmul %33, %37, %cst_19 {dimension_numbers = #tpu.dot_dimension_numbers<[1], [1], [0], [0], [0, 0, 1, 0], [], []>} : vector<16x32xbf16>, vector<16x32xbf16>, vector<16x16xf32> -> vector<16x16xf32>
    %cst_20 = arith.constant dense<0xFF800000> : vector<16xf32>
    %40 = vector.multi_reduction <maximumf>, %39, %cst_20 [1] : vector<16x16xf32> to vector<16xf32>
    %41 = vector.shape_cast %40 : vector<16xf32> to vector<16x1xf32>
    %42 = arith.maximumf %34, %41 : vector<16x1xf32>
    %43 = arith.subf %34, %42 : vector<16x1xf32>
    %44 = math.exp %43 : vector<16x1xf32>
    %45 = vector.broadcast %42 : vector<16x1xf32> to vector<16x16xf32>
    %46 = arith.subf %39, %45 : vector<16x16xf32>
    %47 = math.exp %46 : vector<16x16xf32>
    %48 = arith.mulf %44, %35 : vector<16x1xf32>
    %cst_21 = arith.constant dense<0.000000e+00> : vector<16xf32>
    %49 = vector.multi_reduction <add>, %47, %cst_21 [1] : vector<16x16xf32> to vector<16xf32>
    %50 = vector.shape_cast %49 : vector<16xf32> to vector<16x1xf32>
    %51 = arith.addf %48, %50 : vector<16x1xf32>
    %52 = vector.broadcast %44 : vector<16x1xf32> to vector<16x32xf32>
    %53 = arith.mulf %52, %36 : vector<16x32xf32>
    %54 = arith.truncf %47 : vector<16x16xf32> to vector<16x16xbf16>
    %cst_22 = arith.constant dense<0.000000e+00> : vector<16x32xf32>
    %55 = tpu.matmul %54, %38, %cst_22 {dimension_numbers = #tpu.dot_dimension_numbers<[1], [0], [0], [1], [0, 0, 1, 1], [], []>} : vector<16x16xbf16>, vector<16x32xbf16>, vector<16x32xf32> -> vector<16x32xf32>
    %56 = arith.addf %53, %55 : vector<16x32xf32>
    %57 = tpu.reciprocal %51 {approx = true} : vector<16x1xf32> -> vector<16x1xf32>
    %58 = vector.broadcast %57 : vector<16x1xf32> to vector<16x32xf32>
    %59 = arith.mulf %56, %58 : vector<16x32xf32>
    %c0_23 = arith.constant 0 : index
    %c0_24 = arith.constant 0 : index
    %60 = vector.load %arg16[%c0_23, %c0_24] : memref<16x128xf32, #tpu.memory_space<vmem>>, vector<16x32xf32>
    tpu.vector_store %arg16[%c0_23, %c0_24], %59 {strides = array<i32>} : memref<16x128xf32, #tpu.memory_space<vmem>>, vector<16x32xf32>,
    %61 = vector.extract_strided_slice %32 {offsets = [0, 32], sizes = [16, 32], strides = [1, 1]} : vector<16x384xbf16> to vector<16x32xbf16>
    %cst_25 = arith.constant 0xFF800000 : f32
    %62 = vector.broadcast %cst_25 : f32 to vector<16x1xf32>
    %cst_26 = arith.constant 0.000000e+00 : f32
    %63 = vector.broadcast %cst_26 : f32 to vector<16x1xf32>
    %cst_27 = arith.constant 0.000000e+00 : f32
    %64 = vector.broadcast %cst_27 : f32 to vector<16x32xf32>
    %65 = vector.extract_strided_slice %32 {offsets = [0, 160], sizes = [16, 32], strides = [1, 1]} : vector<16x384xbf16> to vector<16x32xbf16>
    %66 = vector.extract_strided_slice %32 {offsets = [0, 288], sizes = [16, 32], strides = [1, 1]} : vector<16x384xbf16> to vector<16x32xbf16>
    %cst_28 = arith.constant dense<0.000000e+00> : vector<16x16xf32>
    %67 = tpu.matmul %61, %65, %cst_28 {dimension_numbers = #tpu.dot_dimension_numbers<[1], [1], [0], [0], [0, 0, 1, 0], [], []>} : vector<16x32xbf16>, vector<16x32xbf16>, vector<16x16xf32> -> vector<16x16xf32>
    %cst_29 = arith.constant dense<0xFF800000> : vector<16xf32>
    %68 = vector.multi_reduction <maximumf>, %67, %cst_29 [1] : vector<16x16xf32> to vector<16xf32>
    %69 = vector.shape_cast %68 : vector<16xf32> to vector<16x1xf32>
    %70 = arith.maximumf %62, %69 : vector<16x1xf32>
    %71 = arith.subf %62, %70 : vector<16x1xf32>
    %72 = math.exp %71 : vector<16x1xf32>
    %73 = vector.broadcast %70 : vector<16x1xf32> to vector<16x16xf32>
    %74 = arith.subf %67, %73 : vector<16x16xf32>
    %75 = math.exp %74 : vector<16x16xf32>
    %76 = arith.mulf %72, %63 : vector<16x1xf32>
    %cst_30 = arith.constant dense<0.000000e+00> : vector<16xf32>
    %77 = vector.multi_reduction <add>, %75, %cst_30 [1] : vector<16x16xf32> to vector<16xf32>
    %78 = vector.shape_cast %77 : vector<16xf32> to vector<16x1xf32>
    %79 = arith.addf %76, %78 : vector<16x1xf32>
    %80 = vector.broadcast %72 : vector<16x1xf32> to vector<16x32xf32>
    %81 = arith.mulf %80, %64 : vector<16x32xf32>
    %82 = arith.truncf %75 : vector<16x16xf32> to vector<16x16xbf16>
    %cst_31 = arith.constant dense<0.000000e+00> : vector<16x32xf32>
    %83 = tpu.matmul %82, %66, %cst_31 {dimension_numbers = #tpu.dot_dimension_numbers<[1], [0], [0], [1], [0, 0, 1, 1], [], []>} : vector<16x16xbf16>, vector<16x32xbf16>, vector<16x32xf32> -> vector<16x32xf32>
    %84 = arith.addf %81, %83 : vector<16x32xf32>
    %85 = tpu.reciprocal %79 {approx = true} : vector<16x1xf32> -> vector<16x1xf32>
    %86 = vector.broadcast %85 : vector<16x1xf32> to vector<16x32xf32>
    %87 = arith.mulf %84, %86 : vector<16x32xf32>
    %c0_32 = arith.constant 0 : index
    %c32 = arith.constant 32 : index
    %88 = vector.load %arg16[%c0_32, %c32] : memref<16x128xf32, #tpu.memory_space<vmem>>, vector<16x32xf32>
    tpu.vector_store %arg16[%c0_32, %c32], %87 {strides = array<i32>} : memref<16x128xf32, #tpu.memory_space<vmem>>, vector<16x32xf32>,
    %89 = vector.extract_strided_slice %32 {offsets = [0, 64], sizes = [16, 32], strides = [1, 1]} : vector<16x384xbf16> to vector<16x32xbf16>
    %cst_33 = arith.constant 0xFF800000 : f32
    %90 = vector.broadcast %cst_33 : f32 to vector<16x1xf32>
    %cst_34 = arith.constant 0.000000e+00 : f32
    %91 = vector.broadcast %cst_34 : f32 to vector<16x1xf32>
    %cst_35 = arith.constant 0.000000e+00 : f32
    %92 = vector.broadcast %cst_35 : f32 to vector<16x32xf32>
    %93 = vector.extract_strided_slice %32 {offsets = [0, 192], sizes = [16, 32], strides = [1, 1]} : vector<16x384xbf16> to vector<16x32xbf16>
    %94 = vector.extract_strided_slice %32 {offsets = [0, 320], sizes = [16, 32], strides = [1, 1]} : vector<16x384xbf16> to vector<16x32xbf16>
    %cst_36 = arith.constant dense<0.000000e+00> : vector<16x16xf32>
    %95 = tpu.matmul %89, %93, %cst_36 {dimension_numbers = #tpu.dot_dimension_numbers<[1], [1], [0], [0], [0, 0, 1, 0], [], []>} : vector<16x32xbf16>, vector<16x32xbf16>, vector<16x16xf32> -> vector<16x16xf32>
    %cst_37 = arith.constant dense<0xFF800000> : vector<16xf32>
    %96 = vector.multi_reduction <maximumf>, %95, %cst_37 [1] : vector<16x16xf32> to vector<16xf32>
    %97 = vector.shape_cast %96 : vector<16xf32> to vector<16x1xf32>
    %98 = arith.maximumf %90, %97 : vector<16x1xf32>
    %99 = arith.subf %90, %98 : vector<16x1xf32>
    %100 = math.exp %99 : vector<16x1xf32>
    %101 = vector.broadcast %98 : vector<16x1xf32> to vector<16x16xf32>
    %102 = arith.subf %95, %101 : vector<16x16xf32>
    %103 = math.exp %102 : vector<16x16xf32>
    %104 = arith.mulf %100, %91 : vector<16x1xf32>
    %cst_38 = arith.constant dense<0.000000e+00> : vector<16xf32>
    %105 = vector.multi_reduction <add>, %103, %cst_38 [1] : vector<16x16xf32> to vector<16xf32>
    %106 = vector.shape_cast %105 : vector<16xf32> to vector<16x1xf32>
    %107 = arith.addf %104, %106 : vector<16x1xf32>
    %108 = vector.broadcast %100 : vector<16x1xf32> to vector<16x32xf32>
    %109 = arith.mulf %108, %92 : vector<16x32xf32>
    %110 = arith.truncf %103 : vector<16x16xf32> to vector<16x16xbf16>
    %cst_39 = arith.constant dense<0.000000e+00> : vector<16x32xf32>
    %111 = tpu.matmul %110, %94, %cst_39 {dimension_numbers = #tpu.dot_dimension_numbers<[1], [0], [0], [1], [0, 0, 1, 1], [], []>} : vector<16x16xbf16>, vector<16x32xbf16>, vector<16x32xf32> -> vector<16x32xf32>
    %112 = arith.addf %109, %111 : vector<16x32xf32>
    %113 = tpu.reciprocal %107 {approx = true} : vector<16x1xf32> -> vector<16x1xf32>
    %114 = vector.broadcast %113 : vector<16x1xf32> to vector<16x32xf32>
    %115 = arith.mulf %112, %114 : vector<16x32xf32>
    %c0_40 = arith.constant 0 : index
    %c64 = arith.constant 64 : index
    %116 = vector.load %arg16[%c0_40, %c64] : memref<16x128xf32, #tpu.memory_space<vmem>>, vector<16x32xf32>
    tpu.vector_store %arg16[%c0_40, %c64], %115 {strides = array<i32>} : memref<16x128xf32, #tpu.memory_space<vmem>>, vector<16x32xf32>,
    %117 = vector.extract_strided_slice %32 {offsets = [0, 96], sizes = [16, 32], strides = [1, 1]} : vector<16x384xbf16> to vector<16x32xbf16>
    %cst_41 = arith.constant 0xFF800000 : f32
    %118 = vector.broadcast %cst_41 : f32 to vector<16x1xf32>
    %cst_42 = arith.constant 0.000000e+00 : f32
    %119 = vector.broadcast %cst_42 : f32 to vector<16x1xf32>
    %cst_43 = arith.constant 0.000000e+00 : f32
    %120 = vector.broadcast %cst_43 : f32 to vector<16x32xf32>
    %121 = vector.extract_strided_slice %32 {offsets = [0, 224], sizes = [16, 32], strides = [1, 1]} : vector<16x384xbf16> to vector<16x32xbf16>
    %122 = vector.extract_strided_slice %32 {offsets = [0, 352], sizes = [16, 32], strides = [1, 1]} : vector<16x384xbf16> to vector<16x32xbf16>
    %cst_44 = arith.constant dense<0.000000e+00> : vector<16x16xf32>
    %123 = tpu.matmul %117, %121, %cst_44 {dimension_numbers = #tpu.dot_dimension_numbers<[1], [1], [0], [0], [0, 0, 1, 0], [], []>} : vector<16x32xbf16>, vector<16x32xbf16>, vector<16x16xf32> -> vector<16x16xf32>
    %cst_45 = arith.constant dense<0xFF800000> : vector<16xf32>
    %124 = vector.multi_reduction <maximumf>, %123, %cst_45 [1] : vector<16x16xf32> to vector<16xf32>
    %125 = vector.shape_cast %124 : vector<16xf32> to vector<16x1xf32>
    %126 = arith.maximumf %118, %125 : vector<16x1xf32>
    %127 = arith.subf %118, %126 : vector<16x1xf32>
    %128 = math.exp %127 : vector<16x1xf32>
    %129 = vector.broadcast %126 : vector<16x1xf32> to vector<16x16xf32>
    %130 = arith.subf %123, %129 : vector<16x16xf32>
    %131 = math.exp %130 : vector<16x16xf32>
    %132 = arith.mulf %128, %119 : vector<16x1xf32>
    %cst_46 = arith.constant dense<0.000000e+00> : vector<16xf32>
    %133 = vector.multi_reduction <add>, %131, %cst_46 [1] : vector<16x16xf32> to vector<16xf32>
    %134 = vector.shape_cast %133 : vector<16xf32> to vector<16x1xf32>
    %135 = arith.addf %132, %134 : vector<16x1xf32>
    %136 = vector.broadcast %128 : vector<16x1xf32> to vector<16x32xf32>
    %137 = arith.mulf %136, %120 : vector<16x32xf32>
    %138 = arith.truncf %131 : vector<16x16xf32> to vector<16x16xbf16>
    %cst_47 = arith.constant dense<0.000000e+00> : vector<16x32xf32>
    %139 = tpu.matmul %138, %122, %cst_47 {dimension_numbers = #tpu.dot_dimension_numbers<[1], [0], [0], [1], [0, 0, 1, 1], [], []>} : vector<16x16xbf16>, vector<16x32xbf16>, vector<16x32xf32> -> vector<16x32xf32>
    %140 = arith.addf %137, %139 : vector<16x32xf32>
    %141 = tpu.reciprocal %135 {approx = true} : vector<16x1xf32> -> vector<16x1xf32>
    %142 = vector.broadcast %141 : vector<16x1xf32> to vector<16x32xf32>
    %143 = arith.mulf %140, %142 : vector<16x32xf32>
    %c0_48 = arith.constant 0 : index
    %c96 = arith.constant 96 : index
    %144 = vector.load %arg16[%c0_48, %c96] : memref<16x128xf32, #tpu.memory_space<vmem>>, vector<16x32xf32>
    tpu.vector_store %arg16[%c0_48, %c96], %143 {strides = array<i32>} : memref<16x128xf32, #tpu.memory_space<vmem>>, vector<16x32xf32>,
    %c0_49 = arith.constant 0 : index
    %c0_50 = arith.constant 0 : index
    %145 = vector.load %arg16[%c0_49, %c0_50] : memref<16x128xf32, #tpu.memory_space<vmem>>, vector<16x128xf32>
    %146 = arith.truncf %145 : vector<16x128xf32> to vector<16x128xbf16>
    %c0_51 = arith.constant 0 : index
    %c0_52 = arith.constant 0 : index
    %c0_53 = arith.constant 0 : index
    %147 = vector.load %arg6[%c0_51, %c0_52, %c0_53] : memref<1x128x128xbf16, #tpu.memory_space<vmem>>, vector<1x128x128xbf16>
    %148 = vector.shape_cast %147 : vector<1x128x128xbf16> to vector<128x128xbf16>
    %cst_54 = arith.constant dense<0.000000e+00> : vector<16x128xf32>
    %149 = tpu.matmul %146, %148, %cst_54 {dimension_numbers = #tpu.dot_dimension_numbers<[1], [0], [0], [1], [0, 0, 1, 1], [], []>} : vector<16x128xbf16>, vector<128x128xbf16>, vector<16x128xf32> -> vector<16x128xf32>
    %c0_55 = arith.constant 0 : index
    %c0_56 = arith.constant 0 : index
    %c0_57 = arith.constant 0 : index
    %150 = vector.load %arg7[%c0_55, %c0_56, %c0_57] : memref<1x1x128xf32, #tpu.memory_space<vmem>>, vector<1x1x128xf32>
    %151 = vector.shape_cast %150 : vector<1x1x128xf32> to vector<1x128xf32>
    %152 = vector.broadcast %151 : vector<1x128xf32> to vector<16x128xf32>
    %153 = arith.addf %149, %152 : vector<16x128xf32>
    %154 = arith.addf %3, %153 : vector<16x128xf32>
    %c0_58 = arith.constant 0 : index
    %c0_59 = arith.constant 0 : index
    %c0_60 = arith.constant 0 : index
    %155 = vector.load %arg8[%c0_58, %c0_59, %c0_60] : memref<1x1x128xf32, #tpu.memory_space<vmem>>, vector<1x1x128xf32>
    %156 = vector.shape_cast %155 : vector<1x1x128xf32> to vector<1x128xf32>
    %c0_61 = arith.constant 0 : index
    %c0_62 = arith.constant 0 : index
    %c0_63 = arith.constant 0 : index
    %157 = vector.load %arg9[%c0_61, %c0_62, %c0_63] : memref<1x1x128xf32, #tpu.memory_space<vmem>>, vector<1x1x128xf32>
    %158 = vector.shape_cast %157 : vector<1x1x128xf32> to vector<1x128xf32>
    %cst_64 = arith.constant dense<0.000000e+00> : vector<16xf32>
    %159 = vector.multi_reduction <add>, %154, %cst_64 [1] : vector<16x128xf32> to vector<16xf32>
    %160 = vector.shape_cast %159 : vector<16xf32> to vector<16x1xf32>
    %cst_65 = arith.constant 1.280000e+02 : f32
    %161 = vector.broadcast %cst_65 : f32 to vector<16x1xf32>
    %162 = arith.divf %160, %161 : vector<16x1xf32>
    %163 = vector.broadcast %162 : vector<16x1xf32> to vector<16x128xf32>
    %164 = arith.subf %154, %163 : vector<16x128xf32>
    %165 = arith.mulf %164, %164 : vector<16x128xf32>
    %cst_66 = arith.constant dense<0.000000e+00> : vector<16xf32>
    %166 = vector.multi_reduction <add>, %165, %cst_66 [1] : vector<16x128xf32> to vector<16xf32>
    %167 = vector.shape_cast %166 : vector<16xf32> to vector<16x1xf32>
    %cst_67 = arith.constant 1.280000e+02 : f32
    %168 = vector.broadcast %cst_67 : f32 to vector<16x1xf32>
    %169 = arith.divf %167, %168 : vector<16x1xf32>
    %cst_68 = arith.constant 9.99999974E-6 : f32
    %170 = vector.broadcast %cst_68 : f32 to vector<16x1xf32>
    %171 = arith.addf %169, %170 : vector<16x1xf32>
    %172 = math.rsqrt %171 : vector<16x1xf32>
    %173 = vector.broadcast %172 : vector<16x1xf32> to vector<16x128xf32>
    %174 = arith.mulf %164, %173 : vector<16x128xf32>
    %175 = vector.broadcast %156 : vector<1x128xf32> to vector<16x128xf32>
    %176 = arith.mulf %174, %175 : vector<16x128xf32>
    %177 = vector.broadcast %158 : vector<1x128xf32> to vector<16x128xf32>
    %178 = arith.addf %176, %177 : vector<16x128xf32>
    %179 = arith.truncf %178 : vector<16x128xf32> to vector<16x128xbf16>
    %c0_69 = arith.constant 0 : index
    %c0_70 = arith.constant 0 : index
    %c0_71 = arith.constant 0 : index
    %180 = vector.load %arg10[%c0_69, %c0_70, %c0_71] : memref<1x128x256xbf16, #tpu.memory_space<vmem>>, vector<1x128x256xbf16>
    %181 = vector.shape_cast %180 : vector<1x128x256xbf16> to vector<128x256xbf16>
    %cst_72 = arith.constant dense<0.000000e+00> : vector<16x256xf32>
    %182 = tpu.matmul %179, %181, %cst_72 {dimension_numbers = #tpu.dot_dimension_numbers<[1], [0], [0], [1], [0, 0, 1, 1], [], []>} : vector<16x128xbf16>, vector<128x256xbf16>, vector<16x256xf32> -> vector<16x256xf32>
    %c0_73 = arith.constant 0 : index
    %c0_74 = arith.constant 0 : index
    %c0_75 = arith.constant 0 : index
    %183 = vector.load %arg11[%c0_73, %c0_74, %c0_75] : memref<1x1x256xf32, #tpu.memory_space<vmem>>, vector<1x1x256xf32>
    %184 = vector.shape_cast %183 : vector<1x1x256xf32> to vector<1x256xf32>
    %185 = vector.broadcast %184 : vector<1x256xf32> to vector<16x256xf32>
    %186 = arith.addf %182, %185 : vector<16x256xf32>
    %cst_76 = arith.constant 5.000000e-01 : f32
    %187 = vector.broadcast %cst_76 : f32 to vector<16x256xf32>
    %188 = arith.mulf %187, %186 : vector<16x256xf32>
    %cst_77 = arith.constant 4.471500e-02 : f32
    %189 = vector.broadcast %cst_77 : f32 to vector<16x256xf32>
    %190 = arith.mulf %189, %186 : vector<16x256xf32>
    %191 = arith.mulf %190, %186 : vector<16x256xf32>
    %192 = arith.mulf %191, %186 : vector<16x256xf32>
    %193 = arith.addf %186, %192 : vector<16x256xf32>
    %cst_78 = arith.constant 0.797884583 : f32
    %194 = vector.broadcast %cst_78 : f32 to vector<16x256xf32>
    %195 = arith.mulf %194, %193 : vector<16x256xf32>
    %196 = math.tanh %195 : vector<16x256xf32>
    %cst_79 = arith.constant 1.000000e+00 : f32
    %197 = vector.broadcast %cst_79 : f32 to vector<16x256xf32>
    %198 = arith.addf %197, %196 : vector<16x256xf32>
    %199 = arith.mulf %188, %198 : vector<16x256xf32>
    %200 = arith.truncf %199 : vector<16x256xf32> to vector<16x256xbf16>
    %c0_80 = arith.constant 0 : index
    %c0_81 = arith.constant 0 : index
    %c0_82 = arith.constant 0 : index
    %201 = vector.load %arg12[%c0_80, %c0_81, %c0_82] : memref<1x256x128xbf16, #tpu.memory_space<vmem>>, vector<1x256x128xbf16>
    %202 = vector.shape_cast %201 : vector<1x256x128xbf16> to vector<256x128xbf16>
    %cst_83 = arith.constant dense<0.000000e+00> : vector<16x128xf32>
    %203 = tpu.matmul %200, %202, %cst_83 {dimension_numbers = #tpu.dot_dimension_numbers<[1], [0], [0], [1], [0, 0, 1, 1], [], []>} : vector<16x256xbf16>, vector<256x128xbf16>, vector<16x128xf32> -> vector<16x128xf32>
    %c0_84 = arith.constant 0 : index
    %c0_85 = arith.constant 0 : index
    %c0_86 = arith.constant 0 : index
    %204 = vector.load %arg13[%c0_84, %c0_85, %c0_86] : memref<1x1x128xf32, #tpu.memory_space<vmem>>, vector<1x1x128xf32>
    %205 = vector.shape_cast %204 : vector<1x1x128xf32> to vector<1x128xf32>
    %206 = vector.broadcast %205 : vector<1x128xf32> to vector<16x128xf32>
    %207 = arith.addf %203, %206 : vector<16x128xf32>
    %208 = arith.addf %154, %207 : vector<16x128xf32>
    %c0_87 = arith.constant 0 : index
    %c0_88 = arith.constant 0 : index
    %209 = vector.load %arg15[%c0_87, %c0_88] : memref<16x128xf32, #tpu.memory_space<vmem>>, vector<16x128xf32>
    tpu.vector_store %arg15[%c0_87, %c0_88], %208 {strides = array<i32>} : memref<16x128xf32, #tpu.memory_space<vmem>>, vector<16x128xf32>,
    %c1_i32 = arith.constant 1 : i32
    %210 = arith.cmpi eq, %arg1, %c1_i32 : i32
    %211 = arith.extui %210 : i1 to i32
    %c0_i32_89 = arith.constant 0 : i32
    %212 = arith.cmpi ne, %211, %c0_i32_89 : i32
    scf.if %212 {
      %c0_90 = arith.constant 0 : index
      %c0_91 = arith.constant 0 : index
      %c0_92 = arith.constant 0 : index
      %213 = vector.load %arg14[%c0_90, %c0_91, %c0_92] : memref<1x16x128xf32, #tpu.memory_space<vmem>>, vector<1x16x128xf32>
      %214 = vector.shape_cast %213 : vector<1x16x128xf32> to vector<16x128xf32>
      %215 = vector.shape_cast %208 : vector<16x128xf32> to vector<1x16x128xf32>
      tpu.vector_store %arg14[%c0_90, %c0_91, %c0_92], %215 {strides = array<i32>} : memref<1x16x128xf32, #tpu.memory_space<vmem>>, vector<1x16x128xf32>,
    } else {
    }
    return
  }
  func.func @transform_0(%arg0: i32, %arg1: i32) -> (i32, i32, i32) {
    %c0_i32 = arith.constant 0 : i32
    %c0_i32_0 = arith.constant 0 : i32
    %c0_i32_1 = arith.constant 0 : i32
    return %arg0, %c0_i32, %c0_i32_0 : i32, i32, i32
  }
  func.func @transform_1(%arg0: i32, %arg1: i32) -> (i32, i32, i32) {
    %c0_i32 = arith.constant 0 : i32
    %c0_i32_0 = arith.constant 0 : i32
    %c0_i32_1 = arith.constant 0 : i32
    return %arg1, %c0_i32, %c0_i32_0 : i32, i32, i32
  }
  func.func @transform_2(%arg0: i32, %arg1: i32) -> (i32, i32, i32) {
    %c0_i32 = arith.constant 0 : i32
    %c0_i32_0 = arith.constant 0 : i32
    %c0_i32_1 = arith.constant 0 : i32
    return %arg1, %c0_i32, %c0_i32_0 : i32, i32, i32
  }
  func.func @transform_3(%arg0: i32, %arg1: i32) -> (i32, i32, i32) {
    %c0_i32 = arith.constant 0 : i32
    %c0_i32_0 = arith.constant 0 : i32
    %c0_i32_1 = arith.constant 0 : i32
    return %arg1, %c0_i32, %c0_i32_0 : i32, i32, i32
  }
  func.func @transform_4(%arg0: i32, %arg1: i32) -> (i32, i32, i32) {
    %c0_i32 = arith.constant 0 : i32
    %c0_i32_0 = arith.constant 0 : i32
    %c0_i32_1 = arith.constant 0 : i32
    return %arg1, %c0_i32, %c0_i32_0 : i32, i32, i32
  }
  func.func @transform_5(%arg0: i32, %arg1: i32) -> (i32, i32, i32) {
    %c0_i32 = arith.constant 0 : i32
    %c0_i32_0 = arith.constant 0 : i32
    %c0_i32_1 = arith.constant 0 : i32
    return %arg1, %c0_i32, %c0_i32_0 : i32, i32, i32
  }
  func.func @transform_6(%arg0: i32, %arg1: i32) -> (i32, i32, i32) {
    %c0_i32 = arith.constant 0 : i32
    %c0_i32_0 = arith.constant 0 : i32
    %c0_i32_1 = arith.constant 0 : i32
    return %arg1, %c0_i32, %c0_i32_0 : i32, i32, i32
  }
  func.func @transform_7(%arg0: i32, %arg1: i32) -> (i32, i32, i32) {
    %c0_i32 = arith.constant 0 : i32
    %c0_i32_0 = arith.constant 0 : i32
    %c0_i32_1 = arith.constant 0 : i32
    return %arg1, %c0_i32, %c0_i32_0 : i32, i32, i32
  }
  func.func @transform_8(%arg0: i32, %arg1: i32) -> (i32, i32, i32) {
    %c0_i32 = arith.constant 0 : i32
    %c0_i32_0 = arith.constant 0 : i32
    %c0_i32_1 = arith.constant 0 : i32
    return %arg1, %c0_i32, %c0_i32_0 : i32, i32, i32
  }
  func.func @transform_9(%arg0: i32, %arg1: i32) -> (i32, i32, i32) {
    %c0_i32 = arith.constant 0 : i32
    %c0_i32_0 = arith.constant 0 : i32
    %c0_i32_1 = arith.constant 0 : i32
    return %arg1, %c0_i32, %c0_i32_0 : i32, i32, i32
  }
  func.func @transform_10(%arg0: i32, %arg1: i32) -> (i32, i32, i32) {
    %c0_i32 = arith.constant 0 : i32
    %c0_i32_0 = arith.constant 0 : i32
    %c0_i32_1 = arith.constant 0 : i32
    return %arg1, %c0_i32, %c0_i32_0 : i32, i32, i32
  }
  func.func @transform_11(%arg0: i32, %arg1: i32) -> (i32, i32, i32) {
    %c0_i32 = arith.constant 0 : i32
    %c0_i32_0 = arith.constant 0 : i32
    %c0_i32_1 = arith.constant 0 : i32
    return %arg1, %c0_i32, %c0_i32_0 : i32, i32, i32
  }
  func.func @transform_12(%arg0: i32, %arg1: i32) -> (i32, i32, i32) {
    %c0_i32 = arith.constant 0 : i32
    %c0_i32_0 = arith.constant 0 : i32
    %c0_i32_1 = arith.constant 0 : i32
    return %arg0, %c0_i32, %c0_i32_0 : i32, i32, i32
  }
}

</mosaic_0001>

<bundles_post_ra>
// kernel: tpu_custom_call.1
= control target key start
LH: loop header
LB: loop body
LE: loop exit
PB: predicated region body
PF: predicated region fallthrough
CT: control target
= control target key end

     0   :  { %s3903_s0 = inlined_call_operand.hbm [shape: f32[2,16,128], index: 0, kind: input, shape index: {}]   ;;  %s3904_s1 = inlined_call_operand.hbm [shape: f32[2,1,128], index: 1, kind: input, shape index: {}]   ;;  %s3905_s2 = inlined_call_operand.hbm [shape: f32[2,1,128], index: 2, kind: input, shape index: {}]   ;;  %s3906_s3 = inlined_call_operand.hbm [shape: bf16[2,128,384], index: 3, kind: input, shape index: {}]   ;;  %s3907_s4 = inlined_call_operand.hbm [shape: bf16[2,128,128], index: 4, kind: input, shape index: {}]   ;;  %s3908_s5 = inlined_call_operand.vmem [shape: f32[2,1,128], index: 5, kind: input, shape index: {}]   ;;  %s3909_s6 = inlined_call_operand.hbm [shape: f32[2,1,128], index: 6, kind: input, shape index: {}]   ;;  %s3910_s7 = inlined_call_operand.hbm [shape: f32[2,1,128], index: 7, kind: input, shape index: {}]   ;;  %s3911_s8 = inlined_call_operand.hbm [shape: bf16[2,128,256], index: 8, kind: input, shape index: {}]   ;;  %s3912_s9 = inlined_call_operand.vmem [shape: f32[2,1,256], index: 9, kind: input, shape index: {}]   ;;  %s3913_s10 = inlined_call_operand.hbm [shape: bf16[2,256,128], index: 10, kind: input, shape index: {}]   ;;  %s3914_s11 = inlined_call_operand.vmem [shape: f32[2,1,128], index: 11, kind: input, shape index: {}]   ;;  %s3915_s12 = inlined_call_operand.hbm [shape: f32[2,16,128], index: 12, kind: output, shape index: {}]  }
   0x1   :  { %3932 = sst [smem:[#allocation37_spill]] %s3903_s0 }
   0x2   :  { %3933 = sst [smem:[#allocation38_spill]] %s3904_s1 }
   0x3   :  { %3934 = sst [smem:[#allocation39_spill]] %s3905_s2 }
   0x4   :  { %3935 = sst [smem:[#allocation40_spill]] %s3906_s3 }
   0x5   :  { %3936 = sst [smem:[#allocation41_spill]] %s3907_s4 }
   0x6   :  { %3937 = sst [smem:[#allocation42_spill]] %s3908_s5 }
   0x7   :  { %3938 = sst [smem:[#allocation43_spill]] %s3909_s6 }
   0x8   :  { %3939 = sst [smem:[#allocation44_spill]] %s3910_s7 }
   0x9   :  { %3940 = sst [smem:[#allocation45_spill]] %s3911_s8 }
   0xa   :  { %3941 = sst [smem:[#allocation46_spill]] %s3912_s9 }
   0xb   :  { %3942 = sst [smem:[#allocation47_spill]] %s3913_s10 }
   0xc   :  { %3943 = sst [smem:[#allocation48_spill]] %s3914_s11 }
   0xd   :  { %3944 = sst [smem:[#allocation49_spill]] %s3915_s12 }
   0xe   :  { %17 = vsyncpa [#allocation5], 0 }
   0xf   :  { %19 = vsyncpa [#allocation5 + $0x1], 0 }
  0x10   :  { %20 = vsyncpa [#allocation8], 0 }
  0x11   :  { %22 = vsyncpa [#allocation8 + $0x1], 0 }
  0x12   :  { %23 = vsyncpa [#allocation11], 0 }
  0x13   :  { %25 = vsyncpa [#allocation11 + $0x1], 0 }
  0x14   :  { %26 = vsyncpa [#allocation14], 0 }
  0x15   :  { %28 = vsyncpa [#allocation14 + $0x1], 0 }
  0x16   :  { %29 = vsyncpa [#allocation17], 0 }
  0x17   :  { %31 = vsyncpa [#allocation17 + $0x1], 0 }
  0x18   :  { %32 = vsyncpa [#allocation6], 0 }
  0x19   :  { %34 = vsyncpa [#allocation6 + $0x1], 0  ;;  %s3268_s21 = smov 0   ;;  %s3270_s22 = smov 0  }
  0x1a   :  { %s3272_s23 = smov 0   ;;  %s3274_s24 = smov 0  }
  0x1b   :  { %s3276_s25 = smov 0   ;;  %s3278_s26 = smov 0  }
  0x1c   :  { %s3280_s27 = smov 0   ;;  %s3282_s28 = smov 0  }
  0x1d   :  { %s3284_s29 = smov 0   ;;  %s3286_s30 = smov 0  }
  0x1e   :  { %s3288_s13 = smov 0  }
  0x1f LB: > { %3945 = sst [smem:[#allocation26_spill]] %s3157_s23  ;;  %p67_p0 = scmp.eq.s32.totalorder %s3189_s13, 0  ;;  %s3189_s13 = sphi %s3288_s13, %s40_s13   ;;  %s3185_s30 = sphi %s3286_s30, %s4001_s30   ;;  %s3181_s29 = sphi %s3284_s29, %s4007_s29   ;;  %s3177_s28 = sphi %s3282_s28, %s3999_s28   ;;  %s3173_s27 = sphi %s3280_s27, %s4006_s27   ;;  %s3169_s26 = sphi %s3278_s26, %s3998_s26   ;;  %s3165_s25 = sphi %s3276_s25, %s4005_s25   ;;  %s3161_s24 = sphi %s3274_s24, %s4004_s24   ;;  %s3157_s23 = sphi %s3272_s23, %s3996_s23   ;;  %s3153_s22 = sphi %s3270_s22, %s4003_s22   ;;  %s3149_s21 = sphi %s3268_s21, %s4002_s21  }
  0x20   : > { %3946 = sst [smem:[#allocation27_spill]] %s3169_s26  ;;  %p92_p1 = scmp.ne.s32.totalorder %s3157_s23, %s3153_s22 }
  0x21   : > { %3947 = sst [smem:[#allocation28_spill]] %s3173_s27  ;;  %p98_p2 = scmp.ne.s32.totalorder %s3153_s22, %s3149_s21 }
  0x22   : > { %3948 = sst [smem:[#allocation29_spill]] %s3177_s28  ;;  %p3924_p3 = scmp.lt.s32.totalorder %s3189_s13, 4 }
  0x23   : > { %3949 = sst [smem:[#allocation30_spill]] %s3185_s30  ;;  %p94_p4 = por %p92_p1, %p67_p0 }
  0x24   : > { %s3333_s15 = sand.u32 1, %s3189_s13   ;;  %s3336_s16 = sand.u32 1, %s3157_s23  }
  0x25   : > { %s3950_s1 = sld [smem:[#allocation38_spill]]  ;;  %s433_s14 = scalar_lea.vmem [#allocation7], %s3336_s16 }
  0x26   : > { %s440_s12 = sshll.u32 %s433_s14, 4  ;;  %p3345_p5 = pnand %p3924_p3, %p94_p4  ;;  %s441_s12 = int_to_ptr.vmem [resolvable:$true] %s440_s12 }
  0x27   : > { %p2205_p6 = scmp.ge.s32.totalorder %s3189_s13, 1  ;;  %p603_p7 = scmp.lt.s32.totalorder %s3189_s13, 5 }
  0x28   : > { %s2552_s17 = smul.u32 192, %s3336_s16  ;;  %s3918_s18 = scalar_lea.sflag [#allocation8], %s3333_s15 }
  0x29   : > { %p3357_p8 = pnand %p2205_p6, %p603_p7  ;;  %s3954_s3 = sld [smem:[#allocation40_spill]] }
  0x2a   : > { %s3955_s6 = sld [smem:[#allocation43_spill]]  ;;  %s517_s4 = scalar_lea.vmem [#allocation13], %s3336_s16 }
  0x2b   : > { %s436_s19 = scalar_lea.hbm %s3950_s1, %s3181_s29  ;;  %s468_s1 = scalar_lea.vmem [#allocation10], %s2552_s17 }
  0x2c   : > { %s438_s20 = sshll.u32 %s436_s19, 4  ;;  %s2553_s19 = smul.u32 192, %s3181_s29  ;;  %s439_s20 = int_to_ptr.hbm [resolvable:$true] %s438_s20 }
  0x2d   : > { %2581 = dma.hbm_to_vmem [thread:$0]  (!%p3345_p5), %s439_s20, 16, %s441_s12, %s3918_s18  }
  0x2e   : > { %s3952_s14 = scalar_select %p3357_p8, 1, 0 }
  0x2f   : > { %s476_s11 = sshll.u32 %s468_s1, 4  ;;  %s473_s27 = scalar_lea.hbm %s3954_s3, %s2553_s19  ;;  %s477_s11 = int_to_ptr.vmem [resolvable:$true] %s476_s11 }
  0x30   : > { %3953 = sst [smem:[#allocation31_spill]] %s3952_s14  ;;  %s474_s7 = sshll.u32 %s473_s27, 4  ;;  %s475_s7 = int_to_ptr.hbm [resolvable:$true] %s474_s7 }
  0x31   : > { %s3922_s12 = scalar_lea.sflag [#allocation11], %s3333_s15  ;;  %s3191_s20 = smov 192  }
  0x32   : > { %s3192_s18 = smov 12   ;;  %s520_s1 = scalar_lea.hbm %s3955_s6, %s3181_s29 }
  0x33   : > { %2587 = dma.hbm_to_vmem [thread:$0]  (!%p3345_p5), %s475_s7, 3072, %s477_s11, %s3922_s12, %s3191_s20, %s3191_s20, %s3192_s18  }
  0x34   : > { %s524_s2 = sshll.u32 %s517_s4, 4  ;;  %s522_s0 = sshll.u32 %s520_s1, 4  ;;  %s525_s2 = int_to_ptr.vmem [resolvable:$true] %s524_s2  ;;  %s523_s0 = int_to_ptr.hbm [resolvable:$true] %s522_s0 }
  0x35   : > { %s3920_s5 = scalar_lea.sflag [#allocation14], %s3333_s15  ;;  %s2199_s9 = sshll.u32 %s3336_s16, 7 }
  0x36   : > { %2593 = dma.hbm_to_vmem [thread:$0]  (!%p3345_p5), %s523_s0, 16, %s525_s2, %s3920_s5  }
  0x37   : > { %s2485_s27 = sshll.u32 %s3181_s29, 7  ;;  %s3956_s8 = sld [smem:[#allocation45_spill]] }
  0x38   : > { %s552_s14 = scalar_lea.vmem [#allocation16], %s2199_s9  ;;  %s3921_s20 = scalar_lea.sflag [#allocation17], %s3333_s15 }
  0x39   : > { %s560_s4 = sshll.u32 %s552_s14, 4  ;;  %s3923_s0 = smov 128   ;;  %s561_s4 = int_to_ptr.vmem [resolvable:$true] %s560_s4 }
  0x3a   : > { %s3925_s2 = smov 8   ;;  %s3957_s10 = sld [smem:[#allocation47_spill]] }
  0x3b   : > { %s3401_s5 = sadd.s32 4294967295, %s3189_s13   ;;  %p66_p10 = scmp.ne.s32.totalorder %s3169_s26, %s3165_s25 }
  0x3c   : > { %p72_p11 = scmp.ne.s32.totalorder %s3165_s25, %s3161_s24  ;;  %p73_p13 = scmp.eq.s32.totalorder %s3401_s5, 0 }
  0x3d   : > { %s557_s11 = scalar_lea.hbm %s3956_s8, %s2485_s27  ;;  %p3419_p12 = por %p67_p0, %p66_p10 }
  0x3e   : > { %s558_s18 = sshll.u32 %s557_s11, 4  ;;  %s581_s11 = scalar_lea.vmem [#allocation18], %s2199_s9  ;;  %s559_s18 = int_to_ptr.hbm [resolvable:$true] %s558_s18 }
  0x3f   : > { %2599 = dma.hbm_to_vmem [thread:$0]  (!%p3345_p5), %s559_s18, 2048, %s561_s4, %s3921_s20, %s3923_s0, %s3923_s0, %s3925_s2  }
  0x40   : > { %s586_s19 = scalar_lea.hbm %s3957_s10, %s2485_s27  ;;  %s589_s14 = sshll.u32 %s581_s11, 4  ;;  %s3398_s14 = int_to_ptr.vmem [resolvable:$true] %s589_s14 }
  0x41   : > { %s587_s7 = sshll.u32 %s586_s19, 4  ;;  %s2189_s18 = sadd.s32 4294967294, %s3189_s13   ;;  %s3396_s7 = int_to_ptr.hbm [resolvable:$true] %s587_s7 }
  0x42   : > { %s49_s27 = sadd.s32 1, %s3181_s29  ;;  %s52_s4 = sadd.s32 1, %s3185_s30 }
  0x43   : > { %p50_p9 = scmp.ge.s32.totalorder %s49_s27, 2  ;;  %s59_s9 = sadd.s32 1, %s3169_s26 }
  0x44   : > { %p3429_p4 = por %p73_p13, %p72_p11  ;;  %s3962_s11 = sadd.s32 1, %s3157_s23 }
  0x45   : > { %s4009_s27 = smov (%p50_p9, %s49_s27), 0  ;;  %s4011_s4 = smov (!%p50_p9, %s52_s4), %s3185_s30 }
  0x46   : > { %3958 = sst [smem:[#allocation32_spill]] %s4009_s27  ;;  %p54_p1 = scmp.ge.s32.totalorder %s4011_s4, 2 }
  0x47   : > { %s82_s1 = ssub.s32 %s3181_s29, %s4009_s27  ;;  %p3445_p0 = por %p98_p2, %p73_p13 }
  0x48   : > { %p83_p6 = scmp.eq.s32.totalorder %s82_s1, 0  ;;  %s4013_s4 = smov (%p54_p1, %s4011_s4), 0 }
  0x49   : > { %3961 = sst [smem:[#allocation33_spill]] %s4013_s4  ;;  %s56_s12 = ssub.s32 %s3185_s30, %s4013_s4 }
  0x4a   : > { %s3438_s20 = scalar_select %p83_p6, %s3157_s23, %s3962_s11  }
  0x4b   : > { %p57_p7 = scmp.eq.s32.totalorder %s56_s12, 0  ;;  %p382_p9 = scmp.eq.s32.totalorder %s3401_s5, 3 }
  0x4c   : > { %3963 = sst [smem:[#allocation34_spill]] %s3438_s20  ;;  %p388_p3 = scmp.eq.s32.totalorder %s2189_s18, 3 }
  0x4d   : > { %s408_s2 = sand.u32 1, %s3169_s26   ;;  %p3457_p1 = por %p382_p9, %p66_p10 }
  0x4e   : > { %s3452_s1 = scalar_select %p57_p7, %s3169_s26, %s59_s9  }
  0x4f   : > { %p3464_p2 = por %p388_p3, %p72_p11  ;;  %s2192_s11 = sshll.u32 %s408_s2, 4 }
  0x50   : > { %3965 = sst [smem:[#allocation35_spill]] %s3452_s1  ;;  %s2483_s6 = sshll.u32 %s3185_s30, 4 }
  0x51   : > { %s3967_s21 = scalar_select %p3464_p2, 1, 0 }
  0x52   : > { %s3969_s10 = sld [smem:[#allocation37_spill]]  ;;  %s412_s9 = scalar_lea.vmem [#allocation4], %s2192_s11 }
  0x53   : > { %3968 = sst [smem:[#allocation36_spill]] %s3967_s21  ;;  %s420_s4 = sshll.u32 %s412_s9, 4  ;;  %s421_s4 = int_to_ptr.vmem [resolvable:$true] %s420_s4 }
  0x54   : > { %p3970_p3 = scmp.lt.s32.totalorder %s3189_s13, 4  ;;  %s3971_s20 = sld [smem:[#allocation39_spill]] }
  0x55   : > { %s409_s21 = scalar_lea.sflag [#allocation5], %s408_s2  ;;  %s3972_s8 = smov 8  }
  0x56   : > { %p2576_p10 = pnand %p3970_p3, %p3419_p12  ;;  %s3973_s12 = smov 128  }
  0x57   : > { %s2196_s17 = sshll.u32 %s3336_s16, 6  ;;  %s3974_s11 = scalar_lea.sflag [#allocation8], %s3333_s15 }
  0x58   : > { %s417_s18 = scalar_lea.hbm %s3969_s10, %s2483_s6  ;;  %s450_s6 = scalar_lea.vmem [#allocation9], %s3336_s16 }
  0x59   : > { %s418_s27 = sshll.u32 %s417_s18, 4  ;;  %s457_s10 = sshll.u32 %s450_s6, 4  ;;  %s419_s27 = int_to_ptr.hbm [resolvable:$true] %s418_s27  ;;  %s458_s10 = int_to_ptr.vmem [resolvable:$true] %s457_s10 }
  0x5a   : > { %s453_s30 = scalar_lea.hbm %s3971_s20, %s3181_s29  ;;  %s2484_s26 = sshll.u32 %s3181_s29, 6 }
  0x5b   : > { %s455_s23 = sshll.u32 %s453_s30, 4  ;;  %s3975_s2 = sld [smem:[#allocation41_spill]]  ;;  %s456_s23 = int_to_ptr.hbm [resolvable:$true] %s455_s23 }
  0x5c   : > { %2578 = dma.hbm_to_vmem [thread:$0]  (!%p2576_p10), %s419_s27, 256, %s421_s4, %s409_s21, %s3973_s12, %s3973_s12, %s3972_s8  }
  0x5d   : > { %2584 = dma.hbm_to_vmem [thread:$0]  (!%p3345_p5), %s456_s23, 16, %s458_s10, %s3974_s11  }
  0x5e   : > { %s490_s27 = scalar_lea.vmem [#allocation12], %s2196_s17  ;;  %s3195_s18 = smov 64  }
  0x5f   : > { %s498_s4 = sshll.u32 %s490_s27, 4  ;;  %s3196_s9 = smov 4   ;;  %s499_s4 = int_to_ptr.vmem [resolvable:$true] %s498_s4 }
  0x60   : > { %s3976_s23 = scalar_lea.sflag [#allocation11], %s3333_s15  ;;  %s3977_s6 = sld [smem:[#allocation44_spill]] }
  0x61   : > { %s495_s1 = scalar_lea.hbm %s3975_s2, %s2484_s26  ;;  %s534_s11 = scalar_lea.vmem [#allocation15], %s3336_s16 }
  0x62   : > { %s496_s21 = sshll.u32 %s495_s1, 4  ;;  %s541_s26 = sshll.u32 %s534_s11, 4  ;;  %s497_s21 = int_to_ptr.hbm [resolvable:$true] %s496_s21  ;;  %s542_s26 = int_to_ptr.vmem [resolvable:$true] %s541_s26 }
  0x63   : > { %2590 = dma.hbm_to_vmem [thread:$0]  (!%p3345_p5), %s497_s21, 1024, %s499_s4, %s3976_s23, %s3195_s18, %s3195_s18, %s3196_s9  }
  0x64   : > { %s3978_s17 = scalar_lea.sflag [#allocation14], %s3333_s15  ;;  %s3979_s30 = scalar_lea.sflag [#allocation17], %s3333_s15 }
  0x65   : > { %2602 = dma.hbm_to_vmem [thread:$0]  (!%p3345_p5), %s3396_s7, 2048, %s3398_s14, %s3979_s30, %s3195_s18, %s3195_s18, %s3196_s9  }
  0x66   : > { %s537_s10 = scalar_lea.hbm %s3977_s6, %s3181_s29  ;;  %607 = sbr.rel (%p3357_p8) target bundleno = 2167 (0x877), region = 68 }
  0x67   : > { %s539_s20 = sshll.u32 %s537_s10, 4  ;;  %s3515_s1 = sand.u32 (!%p3357_p8), 1, %s3165_s25   ;;  %s540_s20 = int_to_ptr.hbm [resolvable:$true] %s539_s20 }
  0x68   : > { %2596 = dma.hbm_to_vmem [thread:$0]  (!%p3345_p5), %s540_s20, 16, %s542_s26, %s3978_s17  }
  0x69   : > { %s2206_s16 = sshll.u32 (!%p3357_p8), %s3515_s1, 4  ;;  %s610_s27 = scalar_lea.sflag (!%p3357_p8), [#allocation5], %s3515_s1 }
  0x6a   : > { %s3521_s4 = scalar_lea.vmem (!%p3357_p8), [#allocation4], %s2206_s16 }
  0x6b   : > { %3124 = dma.done.wait (%p3429_p4), %s610_s27, 256  }
  0x6c   : > { %3126 = vsyncadd (%p3429_p4), %s610_s27, 4294967040  ;;  %s619_s28 = sand.u32 1, %s3401_s5   ;;  %s3529_s15 = sand.u32 1, %s3153_s22  }
  0x6d   : > { %s620_s7 = scalar_lea.sflag [#allocation8], %s619_s28 }
  0x6e   : > { %3128 = dma.done.wait (%p3445_p0), %s620_s7, 32  }
  0x6f   : > { %3130 = vsyncadd (%p3445_p0), %s620_s7, 4294967264  ;;  %s2554_s21 = smul.u32 192, %s3529_s15  ;;  %s638_s18 = scalar_lea.sflag [#allocation11], %s619_s28 }
  0x71   : > { %s3538_s9 = scalar_lea.vmem [#allocation10], %s2554_s21 }
  0x72   : > { %3132 = dma.done.wait (%p3445_p0), %s638_s18, 4096  }
  0x73   : > { %3134 = vsyncadd (%p3445_p0), %s638_s18, 4294963200  ;;  %s2207_s5 = sshll.u32 %s3529_s15, 6  ;;  %s658_s8 = scalar_lea.sflag [#allocation14], %s619_s28 }
  0x74   : > { %s3545_s23 = scalar_lea.vmem [#allocation12], %s2207_s5 }
  0x75   : > { %3136 = dma.done.wait (%p3445_p0), %s658_s8, 32  }
  0x76   : > { %3138 = vsyncadd (%p3445_p0), %s658_s8, 4294967264  ;;  %s2208_s6 = sshll.u32 %s3529_s15, 7  ;;  %s676_s11 = scalar_lea.sflag [#allocation17], %s619_s28 }
  0x77   : > { %s3554_s26 = scalar_lea.vmem [#allocation16], %s2208_s6 }
  0x78   : > { %3140 = dma.done.wait (%p3445_p0), %s676_s11, 4096  }
  0x79   : > { %3142 = vsyncadd (%p3445_p0), %s676_s11, 4294963200  ;;  %s3981_s20 = sld [smem:[#allocation28_spill]]  ;;  %s3578_s19 = scalar_lea.vmem [#allocation18], %s2208_s6 }
  0x7a   : > { %s3982_s27 = sld [smem:[#allocation42_spill]]  ;;  %s3582_s14 = scalar_lea.vmem [#allocation19], %s2206_s16 }
  0x7b   : > { %s3983_s5 = sld [smem:[#allocation46_spill]] }
  0x7c   : > { %s3984_s10 = sld [smem:[#allocation48_spill]] }
  0x7f   : > { %p777_p5 = scmp.lt.s32.totalorder %s3981_s20, 1  ;;  %p2212_p8 = scmp.ne.s32.totalorder %s3981_s20, 0 }
  0x81   : > { %s3562_s17 = scalar_select %p777_p5, %s3981_s20, 1 }
  0x82   : > { %791 = sbr.rel (%p2212_p8) target bundleno = 138 (0x8a), region = 108 }
  0x83   : > { %s779_s28 = scalar_lea.vmem %s3982_s27, %s3562_s17  ;;  %s2211_s7 = sshll.u32 %s3562_s17, 1 }
  0x84   : > { %s3572_s8 = scalar_lea.vmem %s3983_s5, %s2211_s7  ;;  %s786_s12 = scalar_lea.vmem %s3984_s10, %s3562_s17 }
  0x87   : > { %v792_v0 = vld [vmem:[%s3521_s4] sm:$0xff]  ;;  %v793_v1 = vld [vmem:[%s3521_s4 + $0x8] sm:$0xff] }
  0x88   : > { %794 = vst [vmem:[#allocation2] sm:$0xff] %v792_v0 }
  0x89   : > { %795 = vst [vmem:[#allocation2 + $0x8] sm:$0xff] %v793_v1 }
  0x8a PF: > { %v3197_v4 = vmov 128.0   ;;  %v2299_v19 = vld [vmem:[%s3538_s9 + $0xa8] sm:$0xf]  ;;  %v2509_v20 = vld [vmem:[%s3538_s9 + $0xb0] sm:$0xf0]  ;;  %s3985_s16 = scalar_lea.vmem [#allocation7], %s3529_s15 }
  0x8b   : > { %2715 = vrcp.f32 %v3197_v4  ;;  %v2508_v21 = vld [vmem:[%s3538_s9 + $0xac] sm:$0xf]  ;;  %v2300_v22 = vor.u32 %v2509_v20, %v2299_v19  ;;  %v2301_v23 = vld [vmem:[%s3538_s9 + $0xb4] sm:$0xf0]  ;;  %v2307_v24 = vld [vmem:[%s3538_s9 + $0xb0] sm:$0xf] }
  0x8c   : > { %v2510_v25 = vld [vmem:[%s3538_s9 + $0xb8] sm:$0xf0]  ;;  %v2304_v26 = vor.u32 %v2508_v21, %v2301_v23  ;;  %v2287_v28 = vld [vmem:[%s3538_s9 + $0x90] sm:$0xf]  ;;  %v2505_v30 = vld [vmem:[%s3538_s9 + $0x94] sm:$0xf] }
  0x8d   : > { %v2308_v27 = vor.u32 %v2510_v25, %v2307_v24  ;;  %1018 = vmatpush.bf16.msra.mxu0 %v2300_v22  ;;  %v2506_v29 = vld [vmem:[%s3538_s9 + $0x98] sm:$0xf0]  ;;  %v2289_v32 = vld [vmem:[%s3538_s9 + $0x9c] sm:$0xf0]  ;;  %v2295_v33 = vld [vmem:[%s3538_s9 + $0x98] sm:$0xf] }
  0x8e   : > { %1032 = vmatpush.bf16.msra.mxu1 %v2304_v26  ;;  %v2288_v31 = vor.u32 %v2506_v29, %v2287_v28  ;;  %v2507_v34 = vld [vmem:[%s3538_s9 + $0xa0] sm:$0xf0]  ;;  %v2292_v35 = vor.u32 %v2505_v30, %v2289_v32  ;;  %v2275_v37 = vld [vmem:[%s3538_s9 + $0x78] sm:$0xf]  ;;  %v2502_v39 = vld [vmem:[%s3538_s9 + $0x7c] sm:$0xf] }
  0x8f   : > { %v3587_v2 = vld [vmem:[#allocation2] sm:$0xff]  ;;  %1046 = vmatpush.bf16.msra.mxu2 %v2308_v27  ;;  %v2296_v36 = vor.u32 %v2507_v34, %v2295_v33  ;;  %v2503_v38 = vld [vmem:[%s3538_s9 + $0x80] sm:$0xf0]  ;;  %v2277_v41 = vld [vmem:[%s3538_s9 + $0x84] sm:$0xf0]  ;;  %s3986_s4 = scalar_lea.vmem [#allocation9], %s3529_s15 }
  0x90   : > { %800 = vadd.xlane.f32.xlu0 %v3587_v2  ;;  %v3590_v3 = vld [vmem:[#allocation2 + $0x8] sm:$0xff]  ;;  %v2276_v40 = vor.u32 %v2503_v38, %v2275_v37  ;;  %v2283_v42 = vld [vmem:[%s3538_s9 + $0x80] sm:$0xf]  ;;  %v2504_v43 = vld [vmem:[%s3538_s9 + $0x88] sm:$0xf0]  ;;  %v2280_v44 = vor.u32 %v2502_v39, %v2277_v41  ;;  %vm1072_vm7 = vcmask 261120  }
  0x91   : > { %v2716_v5 = vpop.eup %2715  ;;  %1019 = vmatpush.bf16.msra.mxu0 %v2288_v31  ;;  %v2284_v45 = vor.u32 %v2504_v43, %v2283_v42  ;;  %v2263_v46 = vld [vmem:[%s3538_s9 + $0x60] sm:$0xf]  ;;  %v2500_v47 = vld [vmem:[%s3538_s9 + $0x68] sm:$0xf0]  ;;  %v2499_v48 = vld [vmem:[%s3538_s9 + $0x64] sm:$0xf] }
  0x92   : > { %v805_v6 = vmul.f32 128.0, %v2716_v5  ;;  %vm809_vm0 = vweird.f32 %v2716_v5  ;;  %1033 = vmatpush.bf16.msra.mxu1 %v2292_v35  ;;  %v2264_v49 = vor.u32 %v2500_v47, %v2263_v46  ;;  %v2265_v50 = vld [vmem:[%s3538_s9 + $0x6c] sm:$0xf0]  ;;  %v2271_v51 = vld [vmem:[%s3538_s9 + $0x68] sm:$0xf]  ;;  %s3199_s6 = smov 96  }
  0x93   : > { %1047 = vmatpush.bf16.msra.mxu2 %v2296_v36  ;;  %v2501_v52 = vld [vmem:[%s3538_s9 + $0x70] sm:$0xf0]  ;;  %v2268_v53 = vor.u32 %v2499_v48, %v2265_v50  ;;  %v2251_v55 = vld [vmem:[%s3538_s9 + $0x48] sm:$0xf]  ;;  %v2496_v57 = vld [vmem:[%s3538_s9 + $0x4c] sm:$0xf] }
  0x94   : > { %v806_v7 = vsub.f32 1.0, %v805_v6  ;;  %v2272_v54 = vor.u32 %v2501_v52, %v2271_v51  ;;  %v2497_v56 = vld [vmem:[%s3538_s9 + $0x50] sm:$0xf0]  ;;  %v2253_v59 = vld [vmem:[%s3538_s9 + $0x54] sm:$0xf0]  ;;  %s3200_s10 = smov 32  }
  0x95   : > { %1020 = vmatpush.bf16.msra.mxu0 %v2276_v40  ;;  %v2252_v58 = vor.u32 %v2497_v56, %v2251_v55  ;;  %v2259_v60 = vld [vmem:[%s3538_s9 + $0x50] sm:$0xf]  ;;  %v2498_v61 = vld [vmem:[%s3538_s9 + $0x58] sm:$0xf0]  ;;  %v2256_v62 = vor.u32 %v2496_v57, %v2253_v59  ;;  %v2493_v4 = vld [vmem:[%s3538_s9 + $0x34] sm:$0xf] }
  0x96   : > { %v807_v8 = vmul.f32 %v2716_v5, %v806_v7  ;;  %1034 = vmatpush.bf16.msra.mxu1 %v2280_v44  ;;  %v2260_v63 = vor.u32 %v2498_v61, %v2259_v60  ;;  %v2239_v0 = vld [vmem:[%s3538_s9 + $0x30] sm:$0xf]  ;;  %v2494_v1 = vld [vmem:[%s3538_s9 + $0x38] sm:$0xf0]  ;;  %v2241_v6 = vld [vmem:[%s3538_s9 + $0x3c] sm:$0xf0] }
  0x97   : > { %1048 = vmatpush.bf16.msra.mxu2 %v2284_v45  ;;  %v2247_v7 = vld [vmem:[%s3538_s9 + $0x38] sm:$0xf]  ;;  %v2235_v19 = vld [vmem:[%s3538_s9 + $0x20] sm:$0xf]  ;;  %v2492_v20 = vld [vmem:[%s3538_s9 + $0x28] sm:$0xf0] }
  0x98   : > { %802 = vadd.xlane.f32.xlu0 %v3590_v3  ;;  %v808_v9 = vadd.f32 %v2716_v5, %v807_v8  ;;  %v2495_v8 = vld [vmem:[%s3538_s9 + $0x40] sm:$0xf0]  ;;  %v2236_v22 = vor.u32 %v2492_v20, %v2235_v19  ;;  %v2215_v23 = vld [vmem:[%s3538_s9] sm:$0xf]  ;;  %v2488_v24 = vld [vmem:[%s3538_s9 + $0x8] sm:$0xf0] }
  0x99   : > { %1021 = vmatpush.bf16.msra.mxu0 %v2264_v49  ;;  %v2487_v25 = vld [vmem:[%s3538_s9 + $0x4] sm:$0xf]  ;;  %v2216_v27 = vor.u32 %v2488_v24, %v2215_v23  ;;  %v2217_v28 = vld [vmem:[%s3538_s9 + $0xc] sm:$0xf0]  ;;  %v2223_v29 = vld [vmem:[%s3538_s9 + $0x8] sm:$0xf] }
  0x9a   : > { %v3593_v10 = vsel %vm809_vm0, %v2716_v5, %v808_v9  ;;  %1035 = vmatpush.bf16.msra.mxu1 %v2268_v53  ;;  %v2240_v5 = vor.u32 %v2494_v1, %v2239_v0  ;;  %v2244_v9 = vor.u32 %v2493_v4, %v2241_v6  ;;  %v2489_v30 = vld [vmem:[%s3538_s9 + $0x10] sm:$0xf0]  ;;  %v2220_v32 = vor.u32 %v2487_v25, %v2217_v28  ;;  %v2709_v51 = vld [vmem:[%s3985_s16] ss:$0 sm:$0xff]  ;;  %s3989_s2 = scalar_lea.vmem [#allocation15], %s3529_s15 }
  0x9b   : > { %1049 = vmatpush.bf16.msra.mxu2 %v2272_v54  ;;  %v2224_v33 = vor.u32 %v2489_v30, %v2223_v29  ;;  %v2710_v56 = vld [vmem:[%s3986_s4] ss:$0 sm:$0xff]  ;;  %vm1093_vm8 = vcmask 130048   ;;  %vm1241_vm9 = vcmask 523520   ;;  %vm1331_vm10 = vcmask 785920  }
  0x9c   : > { %vm1421_vm11 = vcmask 1048320  }
  0x9d   : > { %1022 = vmatpush.bf16.msra.mxu0 %v2252_v58 }
  0x9e   : > { %1036 = vmatpush.bf16.msra.mxu1 %v2256_v62 }
  0x9f   : > { %1050 = vmatpush.bf16.msra.mxu2 %v2260_v63 }
  0xa1   : > { %1023 = vmatpush.bf16.msra.mxu0 %v2240_v5 }
  0xa2   : > { %1037 = vmatpush.bf16.msra.mxu1 %v2244_v9 }
 0x103   : > { %v801_v11 = vpop.xlane.xlu0 %800 }
 0x104   : > { %v811_v12 = vmul.f32 %v3593_v10, %v801_v11  ;;  %v2248_v11 = vor.u32 %v2495_v8, %v2247_v7 }
 0x106   : > { %v3597_v13 = vsub.f32 %v3587_v2, %v811_v12  ;;  %1051 = vmatpush.bf16.msra.mxu2 %v2248_v11  ;;  %v2227_v12 = vld [vmem:[%s3538_s9 + $0x18] sm:$0xf] }
 0x108   : > { %v815_v14 = vmul.f32 %v3597_v13, %v3597_v13 }
 0x10a   : > { %817 = vadd.xlane.f32.xlu1 %v815_v14  ;;  %v2491_v14 = vld [vmem:[%s3538_s9 + $0x20] sm:$0xf0]  ;;  %1052 = vmatpush.bf16.msra.mxu2 %v2236_v22 }
 0x10b   : > { %v803_v15 = vpop.xlane.xlu0 %802 }
 0x10c   : > { %v812_v16 = vmul.f32 %v3593_v10, %v803_v15  ;;  %v2490_v15 = vld [vmem:[%s3538_s9 + $0x1c] sm:$0xf] }
 0x10e   : > { %v3603_v17 = vsub.f32 %v3590_v3, %v812_v16  ;;  %v2228_v16 = vor.u32 %v2491_v14, %v2227_v12  ;;  %1053 = vmatpush.bf16.msra.mxu2 %v2224_v33 }
 0x110   : > { %v816_v18 = vmul.f32 %v3603_v17, %v3603_v17  ;;  %1024 = vmatpush.bf16.msra.mxu0 %v2228_v16 }
 0x112   : > { %819 = vadd.xlane.f32.xlu1 %v816_v18  ;;  %v2229_v18 = vld [vmem:[%s3538_s9 + $0x24] sm:$0xf0]  ;;  %s3198_s9 = smov 64  }
 0x113   : > { %v2232_v21 = vor.u32 %v2490_v15, %v2229_v18 }
 0x114   : > { %1025 = vmatpush.bf16.msra.mxu0 %v2216_v27 }
 0x115   : > { %1038 = vmatpush.bf16.msra.mxu1 %v2232_v21 }
 0x119   : > { %1039 = vmatpush.bf16.msra.mxu1 %v2220_v32 }
 0x17d   : > { %v818_v26 = vpop.xlane.xlu1 %817 }
 0x17e   : > { %v821_v31 = vmul.f32 %v818_v26, %v3593_v10 }
 0x180   : > { %v823_v34 = vadd.f32 1e-05, %v821_v31 }
 0x182   : > { %2717 = vrsqrt.f32 %v823_v34  ;;  %vm831_vm2 = vweird.f32 %v823_v34 }
 0x185   : > { %v820_v35 = vpop.xlane.xlu1 %819 }
 0x186   : > { %v822_v36 = vmul.f32 %v820_v35, %v3593_v10 }
 0x188   : > { %v2718_v37 = vpop.eup %2717  ;;  %v824_v38 = vadd.f32 1e-05, %v822_v36 }
 0x189   : > { %v826_v39 = vmul.f32 %v2718_v37, %v823_v34  ;;  %vm832_vm1 = vweird.f32 %v2718_v37 }
 0x18a   : > { %2719 = vrsqrt.f32 %v824_v38  ;;  %vm833_vm3 = vmor %vm831_vm2, %vm832_vm1  ;;  %vm841_vm5 = vweird.f32 %v824_v38 }
 0x18b   : > { %v827_v40 = vmul.f32 %v2718_v37, %v826_v39 }
 0x18d   : > { %v828_v41 = vmul.f32 0.5, %v827_v40 }
 0x18f   : > { %v829_v42 = vsub.f32 1.5, %v828_v41 }
 0x190   : > { %v2720_v43 = vpop.eup %2719 }
 0x191   : > { %v830_v44 = vmul.f32 %v2718_v37, %v829_v42  ;;  %v836_v45 = vmul.f32 %v2720_v43, %v824_v38  ;;  %vm842_vm4 = vweird.f32 %v2720_v43 }
 0x192   : > { %vm843_vm6 = vmor %vm841_vm5, %vm842_vm4 }
 0x193   : > { %v837_v46 = vmul.f32 %v2720_v43, %v836_v45  ;;  %v834_v47 = vsel %vm833_vm3, %v2718_v37, %v830_v44 }
 0x194   : > { %v845_v50 = vmul.f32 %v834_v47, %v3597_v13 }
 0x195   : > { %v838_v48 = vmul.f32 0.5, %v837_v46 }
 0x196   : > { %v850_v55 = vmul.f32 %v2709_v51, %v845_v50 }
 0x197   : > { %v839_v49 = vsub.f32 1.5, %v838_v48 }
 0x198   : > { %v855_v58 = vadd.f32 %v2710_v56, %v850_v55 }
 0x199   : > { %v840_v52 = vmul.f32 %v2720_v43, %v839_v49 }
 0x19b   : > { %v844_v53 = vsel %vm843_vm6, %v2720_v43, %v840_v52 }
 0x19c   : > { %v846_v54 = vmul.f32 %v844_v53, %v3603_v17 }
 0x19e   : > { %v851_v57 = vmul.f32 %v2709_v51, %v846_v54 }
 0x1a0   : > { %v856_v59 = vadd.f32 %v2710_v56, %v851_v57 }
 0x1a2   : > { %v857_v60 = vpack.c.bf16 %v856_v59, %v855_v58 }
 0x1a4   : > { %1026 = vmatmul.bf16.vlgmr.msra.gmra.mxu0 %v857_v60  ;;  %1040 = vmatmul.bf16.vlgmr.msra.gmra.mxu1 %v857_v60 }
 0x1a5   : > { %1054 = vmatmul.bf16.vlgmr.msra.gmra.mxu2 %v857_v60 }
 0x221   : > { %v1027_v61 = vpop.f32.mrf.mxu0  ;;  %v1041_v13 = vpop.f32.mrf.mxu1 }
 0x222   : > { %v1060_v62 = vpack.c.bf16 %v1041_v13, %v1027_v61 }
 0x224   : > { %v1066_v5 = vunpack.c.l.b16 %v1060_v62  ;;  %v1069_v6 = vunpack.c.h.b16 %v1060_v62 }
 0x228   : > { %v1055_v63 = vpop.f32.mrf.mxu2 }
 0x229   : > { %v1029_v0 = vpop.f32.mrf.mxu0  ;;  %v1043_v1 = vpop.f32.mrf.mxu1  ;;  %v1061_v11 = vpack.c.bf16 %v1055_v63, %v1055_v63 }
 0x22a   : > { %v1062_v4 = vpack.c.bf16 %v1043_v1, %v1029_v0 }
 0x22b   : > { %v1125_v16 = vunpack.c.l.b16 %v1061_v11 }
 0x22c   : > { %v1067_v17 = vunpack.c.l.b16 %v1062_v4  ;;  %v1070_v7 = vunpack.c.h.b16 %v1062_v4 }
 0x22e   : > { %v1068_v8 = vpack.c.b16 %v1067_v17, %v1066_v5  ;;  %v1071_v9 = vpack.c.b16 %v1070_v7, %v1069_v6 }
 0x230   : > { %v1057_v12 = vpop.f32.mrf.mxu2  ;;  %1246 = vrot.lane.b32.xlu2 %v1071_v9, %s3198_s9  ;;  %1156 = vrot.lane.b32.xlu0 %v1071_v9, %s3199_s6  ;;  %v1077_v14 = vsel %vm1072_vm7, %v1071_v9, 0 }
 0x231   : > { %v1063_v15 = vpack.c.bf16 %v1057_v12, %v1057_v12  ;;  %1154 = vrot.lane.b32.xlu1 %v1068_v8, %s3199_s6  ;;  %1086 = vmatpush.bf16.xpose.msra.mxu3 %v1077_v14 }
 0x233   : > { %v1126_v18 = vunpack.c.l.b16 %v1063_v15 }
 0x235   : > { %v3667_v19 = vpack.c.b16 %v1126_v18, %v1125_v16 }
 0x238   : > { %1336 = vrot.lane.b32.xlu0 %v1071_v9, %s3200_s10  ;;  %2309 = vmatmul.msk.bf16.vlgmr.msra.gmra.mxu3 %vm1072_vm7, %v1068_v8 }
 0x239   : > { %1139 = vmatpush.bf16.msrb.mxu3 %v3667_v19  ;;  %1334 = vrot.lane.b32.xlu1 %v1068_v8, %s3200_s10 }
 0x28a   : > { %v1247_v20 = vpop.permute.xlu2 %1246 }
 0x28b   : > { %v1252_v21 = vsel %vm1072_vm7, %v1247_v20, 0 }
 0x28c   : > { %1261 = vmatpush.bf16.xpose.msrb.mxu2 %v1252_v21 }
 0x2a2   : > { %v1157_v22 = vpop.permute.xlu0 %1156 }
 0x2a3   : > { %v1162_v23 = vsel %vm1072_vm7, %v1157_v22, 0  ;;  %v1155_v40 = vpop.permute.xlu1 %1154 }
 0x2a4   : > { %1171 = vmatpush.bf16.xpose.msra.mxu3 %v1162_v23 }
 0x2aa   : > { %v1337_v37 = vpop.permute.xlu0 %1336 }
 0x2ab   : > { %v1342_v39 = vsel %vm1072_vm7, %v1337_v37, 0  ;;  %v1335_v41 = vpop.permute.xlu1 %1334 }
 0x2bb   : > { %v1088_v24 = vpop.f32.mrf.mxu3 }
 0x2bc   : > { %v1094_v25 = vsel %vm1093_vm8, %v1088_v24, -inf }
 0x2bd   : > { %1095 = vmax.xlane.f32.xlu2 %v1094_v25 }
 0x2c3   : > { %v1090_v26 = vpop.f32.mrf.mxu3 }
 0x2c4   : > { %v1097_v27 = vsel %vm1093_vm8, %v1090_v26, -inf }
 0x2c5   : > { %1098 = vmax.xlane.f32.xlu2 %v1097_v27 }
 0x2dd   : > { %1244 = vrot.lane.b32.xlu2 %v1068_v8, %s3198_s9 }
 0x330   : > { %v1096_v28 = vpop.xlane.xlu2 %1095 }
 0x331   : > { %v1106_v29 = vsub.f32 %v1088_v24, %v1096_v28  ;;  %v1100_v42 = vsub.f32 -inf, %v1096_v28 }
 0x333   : > { %v1108_v31 = vmul.f32 1.442695, %v1106_v29  ;;  %v1102_v43 = vmul.f32 1.442695, %v1100_v42 }
 0x335   : > { %2721 = vpow2.f32 %v1108_v31 }
 0x338   : > { %v1099_v30 = vpop.xlane.xlu2 %1098 }
 0x339   : > { %v1107_v32 = vsub.f32 %v1090_v26, %v1099_v30  ;;  %v1101_v44 = vsub.f32 -inf, %v1099_v30 }
 0x33b   : > { %v1110_v33 = vmul.f32 1.442695, %v1107_v32  ;;  %v2722_v35 = vpop.eup %2721  ;;  %v1104_v45 = vmul.f32 1.442695, %v1101_v44 }
 0x33c   : > { %v1114_v12 = vsel %vm1093_vm8, %v2722_v35, 0.0 }
 0x33d   : > { %2723 = vpow2.f32 %v1110_v33 }
 0x33e   : > { %2725 = vpow2.f32 %v1102_v43 }
 0x33f   : > { %2727 = vpow2.f32 %v1104_v45 }
 0x340   : > { %v1245_v34 = vpop.permute.xlu2 %1244 }
 0x341   : > { %2313 = vmatmul.msk.bf16.vlgmr.msrb.gmra.mxu2 %vm1072_vm7, %v1245_v34 }
 0x343   : > { %v3679_v36 = vpop.eup %2723 }
 0x344   : > { %v1122_v38 = vpack.c.bf16 %v3679_v36, %v2722_v35  ;;  %v2726_v48 = vpop.eup %2725 }
 0x345   : > { %v3687_v49 = vmul.f32 0.0, %v2726_v48  ;;  %v2728_v54 = vpop.eup %2727 }
 0x346   : > { %2310 = vmatmul.msk.bf16.vlgmr.msrb.gmra.mxu3 %vm1093_vm8, %v1122_v38  ;;  %v3693_v55 = vmul.f32 0.0, %v2728_v54  ;;  %v1117_v38 = vsel %vm1093_vm8, %v3679_v36, 0.0 }
 0x347   : > { %1351 = vmatpush.bf16.xpose.msrb.mxu3 %v1342_v39 }
 0x356   : > { %2311 = vmatmul.msk.bf16.vlgmr.msra.gmra.mxu3 %vm1072_vm7, %v1155_v40 }
 0x366   : > { %2315 = vmatmul.msk.bf16.vlgmr.msrb.gmra.mxu3 %vm1072_vm7, %v1335_v41 }
 0x3c4   : > { %v1263_v46 = vpop.f32.mrf.mxu2 }
 0x3c5   : > { %v1268_v47 = vsel %vm1093_vm8, %v1263_v46, -inf }
 0x3c6   : > { %1269 = vmax.xlane.f32.xlu1 %v1268_v47 }
 0x3c9   : > { %v1141_v50 = vpop.f32.mrf.mxu3 }
 0x3ca   : > { %v3690_v51 = vadd.f32 %v1141_v50, %v3687_v49 }
 0x3cc   : > { %v1265_v52 = vpop.f32.mrf.mxu2 }
 0x3cd   : > { %v1271_v53 = vsel %vm1093_vm8, %v1265_v52, -inf }
 0x3ce   : > { %1272 = vmax.xlane.f32.xlu0 %v1271_v53 }
 0x3d1   : > { %v1143_v56 = vpop.f32.mrf.mxu3 }
 0x3d2   : > { %v3696_v57 = vadd.f32 %v1143_v56, %v3693_v55 }
 0x3d9   : > { %v1173_v58 = vpop.f32.mrf.mxu3 }
 0x3da   : > { %v1178_v59 = vsel %vm1093_vm8, %v1173_v58, -inf }
 0x3db   : > { %1179 = vmax.xlane.f32.xlu0 %v1178_v59 }
 0x3e1   : > { %v1175_v60 = vpop.f32.mrf.mxu3 }
 0x3e2   : > { %v1181_v61 = vsel %vm1093_vm8, %v1175_v60, -inf }
 0x3e3   : > { %1182 = vmax.xlane.f32.xlu2 %v1181_v61 }
 0x3e9   : > { %v1353_v13 = vpop.f32.mrf.mxu3 }
 0x3ea   : > { %v1358_v62 = vsel %vm1093_vm8, %v1353_v13, -inf }
 0x3eb   : > { %1359 = vmax.xlane.f32.xlu1 %v1358_v62 }
 0x3f1   : > { %v1355_v63 = vpop.f32.mrf.mxu3 }
 0x3f2   : > { %v1361_v0 = vsel %vm1093_vm8, %v1355_v63, -inf }
 0x3f3   : > { %1362 = vmax.xlane.f32.xlu0 %v1361_v0 }
 0x3fb   : > { %1207 = vrot.lane.b32.xlu2 %v3667_v19, %s3199_s6 }
 0x404   : > { %1297 = vrot.lane.b32.xlu1 %v3667_v19, %s3198_s9 }
 0x407   : > { %1387 = vrot.lane.b32.xlu0 %v3667_v19, %s3200_s10 }
 0x439   : > { %v3708_v1 = vpop.xlane.xlu1 %1269 }
 0x43a   : > { %v1280_v4 = vsub.f32 %v1263_v46, %v3708_v1  ;;  %v1274_v61 = vsub.f32 -inf, %v3708_v1 }
 0x43c   : > { %v1282_v5 = vmul.f32 1.442695, %v1280_v4 }
 0x43e   : > { %2729 = vpow2.f32 %v1282_v5 }
 0x441   : > { %v3711_v6 = vpop.xlane.xlu0 %1272 }
 0x442   : > { %v1281_v17 = vsub.f32 %v1265_v52, %v3711_v6  ;;  %v1275_v4 = vsub.f32 -inf, %v3711_v6 }
 0x444   : > { %v1284_v7 = vmul.f32 1.442695, %v1281_v17  ;;  %v2730_v8 = vpop.eup %2729 }
 0x445   : > { %v1288_v9 = vsel %vm1093_vm8, %v2730_v8, 0.0 }
 0x446   : > { %2731 = vpow2.f32 %v1284_v7  ;;  %1289 = vadd.xlane.f32.xlu1 %v1288_v9 }
 0x44c   : > { %v2732_v11 = vpop.eup %2731 }
 0x44d   : > { %v1291_v14 = vsel %vm1093_vm8, %v2732_v11, 0.0  ;;  %v1296_v41 = vpack.c.bf16 %v2732_v11, %v2730_v8  ;;  %v1278_v11 = vmul.f32 1.442695, %v1275_v4 }
 0x44e   : > { %1115 = vadd.xlane.f32.xlu1 %v1114_v12  ;;  %1292 = vadd.xlane.f32.xlu2 %v1291_v14  ;;  %v3717_v15 = vpop.xlane.xlu0 %1179 }
 0x44f   : > { %v1190_v16 = vsub.f32 %v1173_v58, %v3717_v15 }
 0x451   : > { %v1192_v18 = vmul.f32 1.442695, %v1190_v16  ;;  %v1184_v16 = vsub.f32 -inf, %v3717_v15 }
 0x453   : > { %2733 = vpow2.f32 %v1192_v18 }
 0x456   : > { %v1183_v19 = vpop.xlane.xlu2 %1182 }
 0x457   : > { %v1191_v20 = vsub.f32 %v1175_v60, %v1183_v19  ;;  %v1185_v48 = vsub.f32 -inf, %v1183_v19 }
 0x459   : > { %v1194_v21 = vmul.f32 1.442695, %v1191_v20  ;;  %v2734_v22 = vpop.eup %2733  ;;  %v1188_v52 = vmul.f32 1.442695, %v1185_v48  ;;  %v1186_v20 = vmul.f32 1.442695, %v1184_v16 }
 0x45a   : > { %v1198_v23 = vsel %vm1093_vm8, %v2734_v22, 0.0 }
 0x45b   : > { %2735 = vpow2.f32 %v1194_v21  ;;  %1199 = vadd.xlane.f32.xlu2 %v1198_v23 }
 0x45e   : > { %v1360_v24 = vpop.xlane.xlu1 %1359  ;;  %v1208_v25 = vpop.permute.xlu2 %1207 }
 0x45f   : > { %v1370_v26 = vsub.f32 %v1353_v13, %v1360_v24  ;;  %1220 = vmatpush.bf16.msrb.mxu0 %v1208_v25  ;;  %v1364_v56 = vsub.f32 -inf, %v1360_v24 }
 0x461   : > { %v1372_v27 = vmul.f32 1.442695, %v1370_v26  ;;  %v2736_v28 = vpop.eup %2735  ;;  %v1366_v62 = vmul.f32 1.442695, %v1364_v56  ;;  %v2515_v56 = vld [vmem:[%s3545_s23 + $0x20] sm:$0xff] }
 0x462   : > { %v1201_v29 = vsel %vm1093_vm8, %v2736_v28, 0.0  ;;  %v1206_v30 = vpack.c.bf16 %v2736_v28, %v2734_v22 }
 0x463   : > { %2737 = vpow2.f32 %v1372_v27  ;;  %1202 = vadd.xlane.f32.xlu0 %v1201_v29 }
 0x464   : > { %2312 = vmatmul.msk.bf16.vlgmr.msrb.gmra.mxu0 %vm1093_vm8, %v1206_v30 }
 0x466   : > { %v3723_v31 = vpop.xlane.xlu0 %1362 }
 0x467   : > { %v1371_v32 = vsub.f32 %v1355_v63, %v3723_v31  ;;  %v1276_v63 = vmul.f32 1.442695, %v1274_v61  ;;  %v1365_v22 = vsub.f32 -inf, %v3723_v31  ;;  %v2512_v61 = vld [vmem:[%s3545_s23 + $0x8] sm:$0xff] }
 0x469   : > { %v1374_v33 = vmul.f32 1.442695, %v1371_v32  ;;  %v2738_v34 = vpop.eup %2737  ;;  %v1368_v29 = vmul.f32 1.442695, %v1365_v22  ;;  %v2534_v22 = vld [vmem:[%s3554_s26 + $0x74] sm:$0xf0] }
 0x46a   : > { %v1378_v35 = vsel %vm1093_vm8, %v2738_v34, 0.0 }
 0x46b   : > { %2739 = vpow2.f32 %v1374_v33  ;;  %1379 = vadd.xlane.f32.xlu2 %v1378_v35 }
 0x471   : > { %v2740_v37 = vpop.eup %2739 }
 0x472   : > { %v1381_v39 = vsel %vm1093_vm8, %v2740_v37, 0.0  ;;  %v1386_v43 = vpack.c.bf16 %v2740_v37, %v2738_v34 }
 0x473   : > { %1118 = vadd.xlane.f32.xlu2 %v1117_v38  ;;  %1382 = vadd.xlane.f32.xlu0 %v1381_v39 }
 0x476   : > { %v1298_v40 = vpop.permute.xlu1 %1297 }
 0x477   : > { %1310 = vmatpush.bf16.msra.mxu2 %v1298_v40 }
 0x479   : > { %v1388_v42 = vpop.permute.xlu0 %1387 }
 0x47a   : > { %2314 = vmatmul.msk.bf16.vlgmr.msra.gmra.mxu2 %vm1093_vm8, %v1296_v41  ;;  %1400 = vmatpush.bf16.msra.mxu0 %v1388_v42 }
 0x47d   : > { %2316 = vmatmul.msk.bf16.vlgmr.msra.gmra.mxu0 %vm1093_vm8, %v1386_v43 }
 0x4b9   : > { %v1290_v44 = vpop.xlane.xlu1 %1289 }
 0x4c1   : > { %v1116_v45 = vpop.xlane.xlu1 %1115  ;;  %v1293_v50 = vpop.xlane.xlu2 %1292 }
 0x4c2   : > { %v1120_v46 = vadd.f32 %v1116_v45, %v3687_v49 }
 0x4c4   : > { %2741 = vrcp.f32 %v1120_v46 }
 0x4c5   : > { %2743 = vpow2.f32 %v1188_v52  ;;  %v2518_v52 = vld [vmem:[%s3545_s23 + $0x38] sm:$0xff] }
 0x4c6   : > { %1495 = vmatpush.bf16.msrb.mxu1 %v2518_v52  ;;  %v2524_v52 = vld [vmem:[%s3554_s26 + $0x24] sm:$0xf0] }
 0x4ca   : > { %v2742_v36 = vpop.eup %2741 }
 0x4cb   : > { %v1150_v47 = vmul.f32 %v2742_v36, %v3690_v51  ;;  %v2744_v54 = vpop.eup %2743 }
 0x4cc   : > { %v1197_v60 = vmul.f32 0.0, %v2744_v54  ;;  %v2516_v54 = vld [vmem:[%s3545_s23 + $0x28] sm:$0xff] }
 0x4cd   : > { %1152 = vst.msk [vmem:[#allocation3] sm:$0xff] %vm1072_vm7, %v1150_v47 }
 0x4ce   : > { %v1200_v53 = vpop.xlane.xlu2 %1199 }
 0x4d6   : > { %v1203_v58 = vpop.xlane.xlu0 %1202 }
 0x4d7   : > { %v1205_v13 = vadd.f32 %v1203_v58, %v1197_v60 }
 0x4d9   : > { %2745 = vrcp.f32 %v1205_v13  ;;  %v2511_v13 = vld [vmem:[%s3545_s23] sm:$0xff] }
 0x4da   : > { %2747 = vpow2.f32 %v1366_v62 }
 0x4db   : > { %2749 = vpow2.f32 %v1276_v63 }
 0x4de   : > { %v1380_v59 = vpop.xlane.xlu2 %1379 }
 0x4df   : > { %v2746_v7 = vpop.eup %2745 }
 0x4e0   : > { %v2748_v8 = vpop.eup %2747 }
 0x4e1   : > { %v1222_v49 = vpop.f32.mrf.mxu0  ;;  %v2750_v1 = vpop.eup %2749  ;;  %v1376_v12 = vmul.f32 0.0, %v2748_v8 }
 0x4e2   : > { %v1286_v19 = vmul.f32 0.0, %v2750_v1 }
 0x4e3   : > { %v1384_v18 = vadd.f32 %v1380_v59, %v1376_v12  ;;  %v2514_v59 = vld [vmem:[%s3545_s23 + $0x18] sm:$0xff] }
 0x4e4   : > { %v1294_v6 = vadd.f32 %v1290_v44, %v1286_v19 }
 0x4e6   : > { %v1119_v51 = vpop.xlane.xlu2 %1118  ;;  %v1383_v41 = vpop.xlane.xlu0 %1382 }
 0x4e7   : > { %v1121_v0 = vadd.f32 %v1119_v51, %v3693_v55 }
 0x4e9   : > { %v1224_v5 = vpop.f32.mrf.mxu0  ;;  %2751 = vrcp.f32 %v1121_v0 }
 0x4ea   : > { %v1228_v17 = vadd.f32 %v1224_v5, %v1197_v60  ;;  %2753 = vpow2.f32 %v1278_v11  ;;  %v2513_v60 = vld [vmem:[%s3545_s23 + $0x10] sm:$0xff] }
 0x4eb   : > { %2755 = vrcp.f32 %v1384_v18 }
 0x4ec   : > { %v1232_v9 = vmul.f32 %v2746_v7, %v1228_v17  ;;  %2757 = vrcp.f32 %v1294_v6  ;;  %v2711_v7 = vld [vmem:[%s779_s28] ss:$0 sm:$0xff]  ;;  %s3991_s28 = sld [smem:[#allocation28_spill]] }
 0x4ed   : > { %2759 = vpow2.f32 %v1186_v20 }
 0x4ee   : > { %1237 = vrot.lane.b32.xlu1 %v1232_v9, %s3200_s10 }
 0x4ef   : > { %v2752_v14 = vpop.eup %2751 }
 0x4f0   : > { %v1151_v55 = vmul.f32 %v2752_v14, %v3696_v57  ;;  %v2754_v21 = vpop.eup %2753 }
 0x4f1   : > { %v1287_v24 = vmul.f32 0.0, %v2754_v21  ;;  %v2756_v26 = vpop.eup %2755  ;;  %v2407_v21 = vld [vmem:[%s3554_s26 + $0x70] sm:$0xf] }
 0x4f2   : > { %1153 = vst.msk [vmem:[#allocation3 + $0x8] sm:$0xff] %vm1072_vm7, %v1151_v55  ;;  %v2758_v30 = vpop.eup %2757  ;;  %p2477_p11 = scmp.ne.s32.totalorder %s3991_s28, 1 }
 0x4f3   : > { %v1295_v27 = vadd.f32 %v1293_v50, %v1287_v24  ;;  %v2760_v32 = vpop.eup %2759 }
 0x4f4   : > { %v1196_v34 = vmul.f32 0.0, %v2760_v32  ;;  %v2391_v32 = vld [vmem:[%s3554_s26 + $0x50] sm:$0xf] }
 0x4f5   : > { %2761 = vrcp.f32 %v1295_v27  ;;  %v2399_v27 = vld [vmem:[%s3554_s26 + $0x60] sm:$0xf] }
 0x4f6   : > { %2763 = vpow2.f32 %v1368_v29  ;;  %v1204_v31 = vadd.f32 %v1200_v53, %v1196_v34  ;;  %v1227_v43 = vadd.f32 %v1222_v49, %v1196_v34  ;;  %v2517_v53 = vld [vmem:[%s3545_s23 + $0x30] sm:$0xff]  ;;  %v2529_v34 = vld [vmem:[%s3554_s26 + $0x54] sm:$0xf] }
 0x4f7   : > { %1496 = vmatpush.bf16.msrb.mxu1 %v2517_v53  ;;  %v2523_v53 = vld [vmem:[%s3554_s26 + $0x24] sm:$0xf] }
 0x4f8   : > { %2765 = vrcp.f32 %v1204_v31 }
 0x4fa   : > { %v1402_v23 = vpop.f32.mrf.mxu0 }
 0x4fb   : > { %v1407_v25 = vadd.f32 %v1402_v23, %v1376_v12  ;;  %v2762_v38 = vpop.eup %2761  ;;  %1497 = vmatpush.bf16.msrb.mxu1 %v2516_v54  ;;  %v2533_v23 = vld [vmem:[%s3554_s26 + $0x74] sm:$0xf] }
 0x4fc   : > { %v2764_v39 = vpop.eup %2763 }
 0x4fd   : > { %v1411_v15 = vmul.f32 %v2756_v26, %v1407_v25  ;;  %v1312_v28 = vpop.f32.mrf.mxu2  ;;  %v1377_v42 = vmul.f32 0.0, %v2764_v39  ;;  %v2409_v25 = vld [vmem:[%s3554_s26 + $0x78] sm:$0xf0]  ;;  %v2528_v39 = vld [vmem:[%s3554_s26 + $0x44] sm:$0xf0] }
 0x4fe   : > { %v1317_v57 = vadd.f32 %v1312_v28, %v1286_v19  ;;  %v2766_v45 = vpop.eup %2765  ;;  %v2412_v26 = vor.u32 %v2533_v23, %v2409_v25  ;;  %v2531_v28 = vld [vmem:[%s3554_s26 + $0x64] sm:$0xf] }
 0x4ff   : > { %1415 = vrot.lane.b32.xlu1 %v1411_v15, %s3199_s6  ;;  %v1385_v44 = vadd.f32 %v1383_v41, %v1377_v42  ;;  %v1231_v46 = vmul.f32 %v2766_v45, %v1227_v43  ;;  %1498 = vmatpush.bf16.msrb.mxu1 %v2515_v56  ;;  %v2532_v15 = vld [vmem:[%s3554_s26 + $0x64] sm:$0xf0]  ;;  %v2526_v45 = vld [vmem:[%s3554_s26 + $0x34] sm:$0xf0]  ;;  %v2369_v56 = vld [vmem:[%s3554_s26 + $0x28] sm:$0xf0] }
 0x500   : > { %v1321_v33 = vmul.f32 %v2758_v30, %v1317_v57  ;;  %1680 = vmatpush.bf16.msra.mxu3 %v2412_v26  ;;  %v2400_v29 = vor.u32 %v2532_v15, %v2399_v27  ;;  %v2401_v57 = vld [vmem:[%s3554_s26 + $0x68] sm:$0xf0] }
 0x501   : > { %2767 = vrcp.f32 %v1385_v44  ;;  %v2404_v30 = vor.u32 %v2531_v28, %v2401_v57  ;;  %v2375_v44 = vld [vmem:[%s3554_s26 + $0x30] sm:$0xf] }
 0x502   : > { %1325 = vrot.lane.b32.xlu2 %v1321_v33, %s3198_s9  ;;  %v1404_v36 = vpop.f32.mrf.mxu0  ;;  %v2530_v33 = vld [vmem:[%s3554_s26 + $0x54] sm:$0xf0] }
 0x503   : > { %v1408_v47 = vadd.f32 %v1404_v36, %v1377_v42  ;;  %1499 = vmatpush.bf16.msrb.mxu1 %v2514_v59  ;;  %v2392_v31 = vor.u32 %v2530_v33, %v2391_v32  ;;  %v2385_v42 = vld [vmem:[%s3554_s26 + $0x48] sm:$0xf0]  ;;  %v2376_v36 = vor.u32 %v2526_v45, %v2375_v44  ;;  %v2359_v59 = vld [vmem:[%s3554_s26 + $0x10] sm:$0xf]  ;;  %v2713_v32 = vld [vmem:[%s3989_s2] ss:$0 sm:$0xff] }
 0x504   : > { %1681 = vmatpush.bf16.msra.mxu3 %v2404_v30  ;;  %v2546_v44 = vld [vmem:[%s3578_s19 + $0x58] sm:$0xff]  ;;  %v2537_v45 = vld [vmem:[%s3578_s19 + $0x10] sm:$0xff] }
 0x505   : > { %v1314_v35 = vpop.f32.mrf.mxu2 }
 0x506   : > { %v1318_v37 = vadd.f32 %v1314_v35, %v1287_v24  ;;  %v2408_v24 = vor.u32 %v2534_v22, %v2407_v21  ;;  %v2393_v35 = vld [vmem:[%s3554_s26 + $0x58] sm:$0xf0] }
 0x507   : > { %v2768_v48 = vpop.eup %2767  ;;  %1500 = vmatpush.bf16.msrb.mxu1 %v2513_v60  ;;  %v2522_v60 = vld [vmem:[%s3554_s26 + $0x14] sm:$0xf0] }
 0x508   : > { %v1322_v40 = vmul.f32 %v2762_v38, %v1318_v37  ;;  %v1412_v50 = vmul.f32 %v2768_v48, %v1408_v47  ;;  %1666 = vmatpush.bf16.msrb.mxu2 %v2408_v24  ;;  %v2396_v37 = vor.u32 %v2529_v34, %v2393_v35  ;;  %v2383_v38 = vld [vmem:[%s3554_s26 + $0x40] sm:$0xf]  ;;  %v2377_v47 = vld [vmem:[%s3554_s26 + $0x38] sm:$0xf0] }
 0x509   : > { %v2384_v41 = vor.u32 %v2528_v39, %v2383_v38  ;;  %v2542_v35 = vld [vmem:[%s3578_s19 + $0x38] sm:$0xff]  ;;  %v2549_v38 = vld [vmem:[%s3578_s19 + $0x70] sm:$0xff]  ;;  %v2540_v39 = vld [vmem:[%s3578_s19 + $0x28] sm:$0xff] }
 0x50a   : > { %1327 = vrot.lane.b32.xlu0 %v1322_v40, %s3198_s9  ;;  %1682 = vmatpush.bf16.msra.mxu3 %v2396_v37  ;;  %v2527_v40 = vld [vmem:[%s3554_s26 + $0x44] sm:$0xf]  ;;  %v2550_v37 = vld [vmem:[%s3578_s19 + $0x78] sm:$0xff] }
 0x50b   : > { %1501 = vmatpush.bf16.msrb.mxu1 %v2512_v61  ;;  %v2388_v43 = vor.u32 %v2527_v40, %v2385_v42  ;;  %v2521_v61 = vld [vmem:[%s3554_s26 + $0x14] sm:$0xf]  ;;  %1864 = vmatpush.bf16.msrb.mxu0 %v2542_v35  ;;  %v2548_v40 = vld [vmem:[%s3578_s19 + $0x68] sm:$0xff]  ;;  %v2547_v42 = vld [vmem:[%s3578_s19 + $0x60] sm:$0xff] }
 0x50c   : > { %1667 = vmatpush.bf16.msrb.mxu2 %v2400_v29 }
 0x50e   : > { %1683 = vmatpush.bf16.msra.mxu3 %v2388_v43  ;;  %v2538_v43 = vld [vmem:[%s3578_s19 + $0x18] sm:$0xff] }
 0x50f   : > { %1502 = vmatpush.bf16.msrb.mxu1 %v2511_v13 }
 0x510   : > { %1668 = vmatpush.bf16.msrb.mxu2 %v2392_v31 }
 0x512   : > { %1235 = vrot.lane.b32.xlu0 %v1231_v46, %s3200_s10  ;;  %v2525_v46 = vld [vmem:[%s3554_s26 + $0x34] sm:$0xf] }
 0x513   : > { %v2380_v48 = vor.u32 %v2525_v46, %v2377_v47  ;;  %1878 = vmatpush.bf16.msra.mxu1 %v2550_v37  ;;  %v2545_v46 = vld [vmem:[%s3578_s19 + $0x50] sm:$0xff]  ;;  %v2544_v47 = vld [vmem:[%s3578_s19 + $0x48] sm:$0xff] }
 0x514   : > { %1669 = vmatpush.bf16.msrb.mxu2 %v2384_v41  ;;  %v2539_v41 = vld [vmem:[%s3578_s19 + $0x20] sm:$0xff] }
 0x515   : > { %1684 = vmatpush.bf16.msra.mxu3 %v2380_v48  ;;  %v1580_v48 = vld [vmem:[%s3572_s8] sm:$0x3] }
 0x517   : > { %1879 = vmatpush.bf16.msra.mxu1 %v2549_v38  ;;  %v2714_v38 = vld [vmem:[%s786_s12] ss:$0 sm:$0xff] }
 0x518   : > { %1670 = vmatpush.bf16.msrb.mxu2 %v2376_v36  ;;  %v2536_v36 = vld [vmem:[%s3578_s19 + $0x8] sm:$0xff] }
 0x51a   : > { %1417 = vrot.lane.b32.xlu0 %v1412_v50, %s3199_s6  ;;  %v2367_v50 = vld [vmem:[%s3554_s26 + $0x20] sm:$0xf] }
 0x51b   : > { %v2368_v54 = vor.u32 %v2524_v52, %v2367_v50  ;;  %1880 = vmatpush.bf16.msra.mxu1 %v2548_v40  ;;  %v1582_v50 = vperm.slane %v1580_v48, 0  ;;  %v1583_v52 = vperm.slane %v1580_v48, 1 }
 0x51d   : > { %1671 = vmatpush.bf16.msrb.mxu2 %v2368_v54  ;;  %v2543_v54 = vld [vmem:[%s3578_s19 + $0x40] sm:$0xff] }
 0x51f   : > { %1881 = vmatpush.bf16.msra.mxu1 %v2547_v42 }
 0x523   : > { %1882 = vmatpush.bf16.msra.mxu1 %v2546_v44 }
 0x527   : > { %1883 = vmatpush.bf16.msra.mxu1 %v2545_v46 }
 0x52b   : > { %1884 = vmatpush.bf16.msra.mxu1 %v2544_v47 }
 0x52f   : > { %1885 = vmatpush.bf16.msra.mxu1 %v2543_v54 }
 0x55c   : > { %v1326_v63 = vpop.permute.xlu2 %1325 }
 0x560   : > { %v1238_v58 = vpop.permute.xlu1 %1237 }
 0x561   : > { %1243 = vst.msk [vmem:[#allocation3 + $0x8] sm:$0xff] %vm1241_vm9, %v1238_v58  ;;  %v2372_v58 = vor.u32 %v2523_v53, %v2369_v56  ;;  %v2535_v53 = vld [vmem:[%s3578_s19] sm:$0xff] }
 0x563   : > { %1685 = vmatpush.bf16.msra.mxu3 %v2372_v58 }
 0x571   : > { %v1416_v51 = vpop.permute.xlu1 %1415 }
 0x57c   : > { %v1328_v49 = vpop.permute.xlu0 %1327 }
 0x57d   : > { %1333 = vst.msk [vmem:[#allocation3 + $0x8] sm:$0xff] %vm1331_vm10, %v1328_v49  ;;  %v2360_v49 = vor.u32 %v2522_v60, %v2359_v59 }
 0x57f   : > { %1672 = vmatpush.bf16.msrb.mxu2 %v2360_v49 }
 0x584   : > { %v1236_v62 = vpop.permute.xlu0 %1235 }
 0x585   : > { %1242 = vst.msk [vmem:[#allocation3] sm:$0xff] %vm1241_vm9, %v1236_v62  ;;  %v2361_v62 = vld [vmem:[%s3554_s26 + $0x18] sm:$0xf0] }
 0x586   : > { %1332 = vst.msk [vmem:[#allocation3] sm:$0xff] %vm1331_vm10, %v1326_v63  ;;  %v2351_v63 = vld [vmem:[%s3554_s26] sm:$0xf] }
 0x587   : > { %1422 = vst.msk [vmem:[#allocation3] sm:$0xff] %vm1421_vm11, %v1416_v51  ;;  %v2520_v51 = vld [vmem:[%s3554_s26 + $0x4] sm:$0xf0] }
 0x58c   : > { %v1418_v0 = vpop.permute.xlu0 %1417 }
 0x58d   : > { %1423 = vst.msk [vmem:[#allocation3 + $0x8] sm:$0xff] %vm1421_vm11, %v1418_v0 }
 0x58e   : > { %v1424_v4 = vld [vmem:[#allocation3] sm:$0xff] }
 0x594   : > { %v1425_v5 = vld [vmem:[#allocation3 + $0x8] sm:$0xff] }
 0x595   : > { %v1426_v17 = vpack.c.bf16 %v1425_v5, %v1424_v4  ;;  %v2364_v4 = vor.u32 %v2521_v61, %v2361_v62  ;;  %v2519_v5 = vld [vmem:[%s3554_s26 + $0x4] sm:$0xf] }
 0x597   : > { %1503 = vmatmul.bf16.vlgmr.msrb.gmra.mxu1 %v1426_v17  ;;  %v2353_v17 = vld [vmem:[%s3554_s26 + $0x8] sm:$0xf0]  ;;  %1686 = vmatpush.bf16.msra.mxu3 %v2364_v4  ;;  %s3988_s26 = scalar_lea.vmem [#allocation13], %s3529_s15 }
 0x598   : > { %v2712_v15 = vld [vmem:[%s3988_s26] ss:$0 sm:$0xff] }
 0x614   : > { %v1504_v8 = vpop.f32.mrf.mxu1 }
 0x615   : > { %v1505_v9 = vadd.f32 %v2711_v7, %v1504_v8 }
 0x617   : > { %v3764_v11 = vadd.f32 %v1505_v9, %v3587_v2  ;;  %v2356_v9 = vor.u32 %v2519_v5, %v2353_v17 }
 0x619   : > { %1513 = vadd.xlane.f32.xlu2 %v3764_v11  ;;  %1687 = vmatpush.bf16.msra.mxu3 %v2356_v9 }
 0x61c   : > { %v1506_v1 = vpop.f32.mrf.mxu1 }
 0x61d   : > { %v1507_v12 = vadd.f32 %v2711_v7, %v1506_v1  ;;  %v2352_v7 = vor.u32 %v2520_v51, %v2351_v63 }
 0x61f   : > { %v3768_v14 = vadd.f32 %v1507_v12, %v3590_v3  ;;  %1673 = vmatpush.bf16.msrb.mxu2 %v2352_v7 }
 0x621   : > { %1515 = vadd.xlane.f32.xlu1 %v3768_v14 }
 0x68c   : > { %v1514_v16 = vpop.xlane.xlu2 %1513 }
 0x68d   : > { %v1517_v18 = vmul.f32 %v1514_v16, %v3593_v10 }
 0x68f   : > { %v3773_v55 = vsub.f32 %v3764_v11, %v1517_v18 }
 0x691   : > { %v1521_v2 = vmul.f32 %v3773_v55, %v3773_v55 }
 0x693   : > { %1523 = vadd.xlane.f32.xlu0 %v1521_v2 }
 0x694   : > { %v1516_v19 = vpop.xlane.xlu1 %1515 }
 0x695   : > { %v1518_v3 = vmul.f32 %v1516_v19, %v3593_v10 }
 0x697   : > { %v3779_v6 = vsub.f32 %v3768_v14, %v1518_v3 }
 0x699   : > { %v1522_v20 = vmul.f32 %v3779_v6, %v3779_v6 }
 0x69b   : > { %1525 = vadd.xlane.f32.xlu2 %v1522_v20 }
 0x706   : > { %v1524_v13 = vpop.xlane.xlu0 %1523 }
 0x707   : > { %v1527_v0 = vmul.f32 %v1524_v13, %v3593_v10 }
 0x709   : > { %v1529_v8 = vadd.f32 1e-05, %v1527_v0 }
 0x70b   : > { %2769 = vrsqrt.f32 %v1529_v8  ;;  %vm1537_vm13 = vweird.f32 %v1529_v8 }
 0x70e   : > { %v1526_v1 = vpop.xlane.xlu2 %1525 }
 0x70f   : > { %v1528_v12 = vmul.f32 %v1526_v1, %v3593_v10 }
 0x711   : > { %v2770_v16 = vpop.eup %2769  ;;  %v1530_v18 = vadd.f32 1e-05, %v1528_v12 }
 0x712   : > { %v1532_v2 = vmul.f32 %v2770_v16, %v1529_v8  ;;  %vm1538_vm12 = vweird.f32 %v2770_v16 }
 0x713   : > { %2771 = vrsqrt.f32 %v1530_v18  ;;  %vm1539_vm14 = vmor %vm1537_vm13, %vm1538_vm12  ;;  %vm1547_vm0 = vweird.f32 %v1530_v18 }
 0x714   : > { %v1533_v19 = vmul.f32 %v2770_v16, %v1532_v2 }
 0x716   : > { %v1534_v3 = vmul.f32 0.5, %v1533_v19 }
 0x718   : > { %v1535_v20 = vsub.f32 1.5, %v1534_v3 }
 0x719   : > { %v2772_v21 = vpop.eup %2771 }
 0x71a   : > { %v1536_v22 = vmul.f32 %v2770_v16, %v1535_v20  ;;  %v1542_v23 = vmul.f32 %v2772_v21, %v1530_v18  ;;  %vm1548_vm15 = vweird.f32 %v2772_v21 }
 0x71b   : > { %vm1549_vm1 = vmor %vm1547_vm0, %vm1548_vm15 }
 0x71c   : > { %v1543_v24 = vmul.f32 %v2772_v21, %v1542_v23  ;;  %v1540_v25 = vsel %vm1539_vm14, %v2770_v16, %v1536_v22 }
 0x71d   : > { %v1551_v10 = vmul.f32 %v1540_v25, %v3773_v55 }
 0x71e   : > { %v1544_v26 = vmul.f32 0.5, %v1543_v24 }
 0x71f   : > { %v1556_v30 = vmul.f32 %v2712_v15, %v1551_v10 }
 0x720   : > { %v1545_v27 = vsub.f32 1.5, %v1544_v26 }
 0x721   : > { %v1561_v34 = vadd.f32 %v2713_v32, %v1556_v30 }
 0x722   : > { %v1546_v28 = vmul.f32 %v2772_v21, %v1545_v27 }
 0x724   : > { %v1550_v29 = vsel %vm1549_vm1, %v2772_v21, %v1546_v28 }
 0x725   : > { %v1552_v57 = vmul.f32 %v1550_v29, %v3779_v6  ;;  %v2541_v6 = vld [vmem:[%s3578_s19 + $0x30] sm:$0xff] }
 0x726   : > { %1865 = vmatpush.bf16.msrb.mxu0 %v2541_v6 }
 0x727   : > { %v1557_v33 = vmul.f32 %v2712_v15, %v1552_v57 }
 0x729   : > { %v1562_v31 = vadd.f32 %v2713_v32, %v1557_v33 }
 0x72a   : > { %1866 = vmatpush.bf16.msrb.mxu0 %v2540_v39 }
 0x72b   : > { %v1563_v55 = vpack.c.bf16 %v1562_v31, %v1561_v34 }
 0x72d   : > { %1674 = vmatmul.bf16.vlgmr.msrb.gmra.mxu2 %v1563_v55  ;;  %1688 = vmatmul.bf16.vlgmr.msra.gmra.mxu3 %v1563_v55 }
 0x72e   : > { %1867 = vmatpush.bf16.msrb.mxu0 %v2539_v41 }
 0x732   : > { %1868 = vmatpush.bf16.msrb.mxu0 %v2538_v43 }
 0x736   : > { %1869 = vmatpush.bf16.msrb.mxu0 %v2537_v45 }
 0x73a   : > { %1870 = vmatpush.bf16.msrb.mxu0 %v2536_v36 }
 0x73e   : > { %1871 = vmatpush.bf16.msrb.mxu0 %v2535_v53 }
 0x7b0   : > { %v1675_v56 = vpop.f32.mrf.mxu2  ;;  %v1689_v58 = vpop.f32.mrf.mxu3 }
 0x7b1   : > { %v1676_v59 = vadd.f32 %v1675_v56, %v1582_v50  ;;  %v1690_v60 = vadd.f32 %v1689_v58, %v1583_v52 }
 0x7b3   : > { %v1698_v61 = vmul.f32 0.044715, %v1676_v59  ;;  %v1699_v13 = vmul.f32 0.044715, %v1690_v60  ;;  %v1694_v28 = vmul.f32 0.5, %v1676_v59  ;;  %v1695_v30 = vmul.f32 0.5, %v1690_v60 }
 0x7b5   : > { %v1702_v49 = vmul.f32 %v1698_v61, %v1676_v59  ;;  %v1703_v62 = vmul.f32 %v1699_v13, %v1690_v60 }
 0x7b7   : > { %v1706_v63 = vmul.f32 %v1702_v49, %v1676_v59  ;;  %v1707_v51 = vmul.f32 %v1703_v62, %v1690_v60 }
 0x7b8   : > { %v1677_v0 = vpop.f32.mrf.mxu2  ;;  %v1691_v4 = vpop.f32.mrf.mxu3 }
 0x7b9   : > { %v1710_v5 = vadd.f32 %v1706_v63, %v1676_v59  ;;  %v1678_v17 = vadd.f32 %v1677_v0, %v1582_v50  ;;  %v1692_v7 = vadd.f32 %v1691_v4, %v1583_v52  ;;  %v1711_v8 = vadd.f32 %v1707_v51, %v1690_v60 }
 0x7bb   : > { %v1700_v9 = vmul.f32 0.044715, %v1678_v17  ;;  %v1701_v1 = vmul.f32 0.044715, %v1692_v7  ;;  %v1714_v12 = vmul.f32 0.7978846, %v1710_v5 }
 0x7bc   : > { %v1715_v18 = vmul.f32 0.7978846, %v1711_v8  ;;  %v1696_v29 = vmul.f32 0.5, %v1678_v17  ;;  %v1697_v32 = vmul.f32 0.5, %v1692_v7 }
 0x7bd   : > { %v1704_v16 = vmul.f32 %v1700_v9, %v1678_v17  ;;  %v1705_v2 = vmul.f32 %v1701_v1, %v1692_v7  ;;  %2773 = vtanh.f32 %v1714_v12 }
 0x7be   : > { %2775 = vtanh.f32 %v1715_v18 }
 0x7bf   : > { %v1708_v19 = vmul.f32 %v1704_v16, %v1678_v17  ;;  %v1709_v3 = vmul.f32 %v1705_v2, %v1692_v7 }
 0x7c1   : > { %v1712_v20 = vadd.f32 %v1708_v19, %v1678_v17  ;;  %v1713_v21 = vadd.f32 %v1709_v3, %v1692_v7 }
 0x7c3   : > { %v1716_v22 = vmul.f32 0.7978846, %v1712_v20  ;;  %v1717_v23 = vmul.f32 0.7978846, %v1713_v21  ;;  %v2774_v24 = vpop.eup %2773 }
 0x7c4   : > { %v2776_v25 = vpop.eup %2775  ;;  %v1722_v26 = vadd.f32 1.0, %v2774_v24 }
 0x7c5   : > { %2777 = vtanh.f32 %v1716_v22  ;;  %v1723_v10 = vadd.f32 1.0, %v2776_v25 }
 0x7c6   : > { %2779 = vtanh.f32 %v1717_v23  ;;  %v1726_v34 = vmul.f32 %v1722_v26, %v1694_v28 }
 0x7c7   : > { %v1727_v55 = vmul.f32 %v1723_v10, %v1695_v30 }
 0x7cb   : > { %v2778_v27 = vpop.eup %2777 }
 0x7cc   : > { %v2780_v15 = vpop.eup %2779  ;;  %v1724_v57 = vadd.f32 1.0, %v2778_v27 }
 0x7cd   : > { %v1725_v33 = vadd.f32 1.0, %v2780_v15 }
 0x7ce   : > { %v1728_v31 = vmul.f32 %v1724_v57, %v1696_v29 }
 0x7cf   : > { %v1729_v35 = vmul.f32 %v1725_v33, %v1697_v32 }
 0x7d0   : > { %v1730_v37 = vpack.c.bf16 %v1728_v31, %v1726_v34 }
 0x7d1   : > { %v1731_v6 = vpack.c.bf16 %v1729_v35, %v1727_v55 }
 0x7d2   : > { %1872 = vmatmul.bf16.vlgmr.msrb.gmra.mxu0 %v1730_v37 }
 0x7d3   : > { %1886 = vmatmul.bf16.vlgmr.msra.gmra.mxu1 %v1731_v6 }
 0x84f   : > { %v1873_v39 = vpop.f32.mrf.mxu0 }
 0x850   : > { %v1874_v40 = vadd.f32 %v2714_v38, %v1873_v39  ;;  %v1887_v41 = vpop.f32.mrf.mxu1 }
 0x852   : > { %v1888_v42 = vadd.f32 %v1887_v41, %v1874_v40 }
 0x854   : > { %v1892_v43 = vadd.f32 %v1888_v42, %v3764_v11 }
 0x856   : > { %1894 = vst [vmem:[#allocation2] sm:$0xff] %v1892_v43 }
 0x857   : > { %v1875_v44 = vpop.f32.mrf.mxu0 }
 0x858   : > { %v1876_v45 = vadd.f32 %v2714_v38, %v1875_v44  ;;  %v1889_v46 = vpop.f32.mrf.mxu1 }
 0x85a   : > { %v1890_v36 = vadd.f32 %v1889_v46, %v1876_v45  ;;  %1899 = sbr.rel (%p2477_p11) target bundleno = 2145 (0x861), region = 112 }
 0x85c   : > { %v1893_v47 = vadd.f32 %v1890_v36, %v3768_v14 }
 0x85e   : > { %1895 = vst [vmem:[#allocation2 + $0x8] sm:$0xff] %v1893_v47 }
 0x85f   : > { %1900 = vst [vmem:[%s3582_s14] sm:$0xff] %v1892_v43 }
 0x860   : > { %1901 = vst [vmem:[%s3582_s14 + $0x8] sm:$0xff] %v1893_v47 }
 0x861 PF: > { %s3992_s12 = sld [smem:[#allocation29_spill]]  ;;  %s1915_s8 = sshll.u32 %s3582_s14, 4  ;;  %s1916_s8 = int_to_ptr.vmem [resolvable:$true] %s1915_s8 }
 0x862   : > { %s3993_s18 = sld [smem:[#allocation49_spill]]  ;;  %s1903_s11 = scalar_lea.sflag [#allocation6], %s3515_s1 }
 0x867   : > { %s2551_s17 = sshll.u32 %s3992_s12, 4 }
 0x868   : > { %s1914_s5 = scalar_lea.hbm %s3993_s18, %s2551_s17  ;;  %s3071_s10 = scalar_lea.hbm %s3993_s18, 32 }
 0x869   : > { %s1917_s0 = sshll.u32 %s1914_s5, 4  ;;  %s1918_s0 = int_to_ptr.hbm [resolvable:$true] %s1917_s0 }
 0x86a   : > { %s3065_s16 = sshra.s32 %s1918_s0, 4  ;;  %s3066_s16 = int_to_ptr.hbm [resolvable:$true] %s3065_s16 }
 0x86b   : > { %s3067_s4 = scalar_lea.hbm %s3066_s16, 16  ;;  %p3072_p6 = scmp.lt.s32.totalorder %s3066_s16, %s3993_s18 }
 0x86c   : > { %p3068_p12 = scmp.ne.s32.totalorder %s3066_s16, %s3067_s4  ;;  %p3073_p0 = scmp.lt.s32.totalorder %s3071_s10, %s3067_s4 }
 0x86e   : > { %p3069_p13 = pnand %p3068_p12, %p3457_p1  ;;  %p3074_p7 = por %p3073_p0, %p3072_p6 }
 0x870   : > { %p3070_p4 = pneg %p3069_p13 }
 0x872   : > { %p3075_p9 = pnand %p3074_p7, %p3070_p4 }
 0x874   : > { %3078 = shalt.err (!%p3075_p9)
}
 0x875   : > { %s3201_s1 = smov 128   ;;  %s3202_s14 = smov 8  }
 0x876   : > { %2573 = dma.vmem_to_hbm [thread:$0]  (%p3457_p1), %s1916_s8, 256, %s1918_s0, %s1903_s11, %s3201_s1, %s3201_s1, %s3202_s14  }
 0x877 PF: > { %p2608_p3 = scmp.ge.s32.totalorder %s3189_s13, 2  ;;  %s1932_s26 = sand.u32 1, %s3161_s24  }
 0x878   : > { %s1933_s2 = scalar_lea.sflag [#allocation6], %s1932_s26 }
 0x879   : > { %p2604_p10 = pnand %p2608_p3, %p3464_p2 }
 0x87b   : > { %p2605_p5 = pneg %p2604_p10 }
 0x87d   : > { %3144 = dma.done.wait (%p2605_p5), %s1933_s2, 256  }
 0x87e   : > { %3146 = vsyncadd (%p2605_p5), %s1933_s2, 4294967040  ;;  %s40_s13 = sadd.s32 1, %s3189_s13   ;;  %s3995_s15 = sld [smem:[#allocation26_spill]] }
 0x87f   : > { %p37_p8 = scmp.ge.s32.totalorder %s40_s13, 6   ;;  %s3996_s23 = sld [smem:[#allocation34_spill]] }
 0x880   : > { %s3997_s3 = sld [smem:[#allocation27_spill]]  ;;  %s4002_s21 = smov %s3153_s22 }
 0x881   : > { %s3998_s26 = sld [smem:[#allocation35_spill]]  ;;  %s4004_s24 = smov %s3165_s25 }
 0x882   : > { %s3999_s28 = sld [smem:[#allocation30_spill]]  ;;  %s4006_s27 = smov %s3181_s29 }
 0x883   : > { %s4000_s19 = sld [smem:[#allocation32_spill]] }
 0x884   : > { %s4001_s30 = sld [smem:[#allocation33_spill]]  ;;  %s4003_s22 = smov %s3995_s15 }
 0x885   :  { %39 = sbr.rel (!%p37_p8) target bundleno = 31 (0x1f), region = 226 }
 0x886   : > { %s4005_s25 = smov %s3997_s3 }
 0x889   : > { %s4007_s29 = smov %s4000_s19 }
 0x88a   :  { %1939 = vsyncpa [#allocation5], 1 }
 0x88b   :  { %1941 = vsyncpa [#allocation5 + $0x1], 1 }
 0x88c   :  { %1942 = vsyncpa [#allocation8], 1 }
 0x88d   :  { %1944 = vsyncpa [#allocation8 + $0x1], 1 }
 0x88e   :  { %1945 = vsyncpa [#allocation11], 1 }
 0x88f   :  { %1947 = vsyncpa [#allocation11 + $0x1], 1 }
 0x890   :  { %1948 = vsyncpa [#allocation14], 1 }
 0x891   :  { %1950 = vsyncpa [#allocation14 + $0x1], 1 }
 0x892   :  { %1951 = vsyncpa [#allocation17], 1 }
 0x893   :  { %1953 = vsyncpa [#allocation17 + $0x1], 1 }
 0x894   :  { %1954 = vsyncpa [#allocation6], 1 }
 0x895   :  { %1956 = vsyncpa [#allocation6 + $0x1], 1 }

</bundles_post_ra>
